<compile_context>
chip_gen: v6e
topology: v6e:2x2x1
jax: 0.10.0
libtpu: 0.0.40
codegen_flags: <defaults>
</compile_context>

<pallas_src>
from functools import partial

import jax
import jax.numpy as jnp
from jax.experimental import pallas as pl
from jax.experimental.pallas import tpu as pltpu


def _itb_kernel(x_ref,
                wqkv_ref, bqkv_ref, wo_ref, bo_ref,
                w1_ref, b1_ref, w2_ref, b2_ref,
                g1_ref, be1_ref, g2_ref, be2_ref,
                out_ref, attn_ref, *, num_heads):
    mm_dtype = wqkv_ref.dtype                      # bf16 matmul operand dtype
    x3 = x_ref[...]                                # (Bb, V, D)
    Bb, V, D = x3.shape
    rows = Bb * V
    hd = D // num_heads
    scale = 1.0 / (hd ** 0.5)

    # Flatten batch*variate rows; residual path stays f32.
    x2 = x3.reshape(rows, D).astype(jnp.float32)   # (rows, D)

    # --- fused Q/K/V projection: one MXU pass, bf16 in / f32 accumulate ---
    qkv = jnp.dot(x2.astype(mm_dtype), wqkv_ref[...],
                  preferred_element_type=jnp.float32) + bqkv_ref[...]  # (rows, 3D)

    # --- inverted multi-head self-attention over the variate axis ---
    # Each head's output is written into contiguous columns of one (rows, D)
    # VMEM slab; the output projection is then a single full-K matmul.
    for h in range(num_heads):                     # static unroll over heads
        lo = h * hd
        qh = qkv[:, lo:lo + hd].reshape(Bb, V, hd).astype(mm_dtype)
        kh = qkv[:, D + lo:D + lo + hd].reshape(Bb, V, hd).astype(mm_dtype)
        vh = qkv[:, 2 * D + lo:2 * D + lo + hd].reshape(Bb, V, hd).astype(mm_dtype)

        # scores: contract on hd; K-transpose absorbed into the contraction.
        s = jnp.einsum('bqd,bkd->bqk', qh, kh,
                       preferred_element_type=jnp.float32) * scale    # (Bb,V,V)
        s = s - jnp.max(s, axis=-1, keepdims=True)
        p = jnp.exp(s)
        p = p * pl.reciprocal(jnp.sum(p, axis=-1, keepdims=True), approx=True)

        ah = jnp.einsum('bqk,bkd->bqd', p.astype(mm_dtype), vh,
                        preferred_element_type=jnp.float32)           # (Bb,V,hd)
        attn_ref[:, lo:lo + hd] = ah.reshape(rows, hd).astype(mm_dtype)

    attn_out = jnp.dot(attn_ref[...], wo_ref[...],
                       preferred_element_type=jnp.float32) + bo_ref[...]

    def layer_norm(y, g, b):
        # Fused reduction form: sum and sum-of-squares in independent passes.
        inv_d = 1.0 / y.shape[-1]
        s1 = jnp.sum(y, axis=-1, keepdims=True)
        s2 = jnp.sum(y * y, axis=-1, keepdims=True)
        mu = s1 * inv_d
        var = jnp.maximum(s2 * inv_d - mu * mu, 0.0)
        return (y - mu) * jax.lax.rsqrt(var + 1e-5) * g + b

    # --- residual + LayerNorm 1 ---
    x1 = layer_norm(x2 + attn_out, g1_ref[...], be1_ref[...])

    # --- feed-forward network (dropout = identity in eval mode) ---
    h1 = jnp.dot(x1.astype(mm_dtype), w1_ref[...],
                 preferred_element_type=jnp.float32) + b1_ref[...]
    h1 = jnp.maximum(h1, 0.0)
    ffn = jnp.dot(h1.astype(mm_dtype), w2_ref[...],
                  preferred_element_type=jnp.float32) + b2_ref[...]

    # --- residual + LayerNorm 2 ---
    out = layer_norm(x1 + ffn, g2_ref[...], be2_ref[...])
    out_ref[...] = out.reshape(Bb, V, D).astype(out_ref.dtype)


def _block_vmem_bytes(bb, V, D, dim_ff):
    """Rough per-step VMEM footprint estimate (bytes)."""
    rows = bb * V
    io_blocks = 2 * 2 * rows * D * 4                       # x + out blocks, double-buffered, f32
    weights = 2 * 2 * (3 * D * D + D * D + D * dim_ff + dim_ff * D)  # bf16 weights, double-buffered
    small = 2 * 4 * (3 * D + D + dim_ff + 5 * D)           # biases + LN params, f32
    scratch = rows * D * 2                                 # bf16 attention slab
    live = rows * 4 * (3 * D + dim_ff + 6 * D)             # qkv, h1, f32 temporaries
    return io_blocks + weights + small + scratch + live


def _pick_block_batch(B, V, D, dim_ff, *, max_rows=512, vmem_budget=40 << 20):
    """Block-batch: big enough to amortize per-step overhead, small enough to
    fit v7x VMEM, and >= 2 grid steps when B >= 2 (two TensorCores on v7x)."""
    bb_cap = B // 2 if B >= 2 else 1
    bb = max(1, min(bb_cap, max(1, max_rows // max(V, 1))))
    while bb > 1 and _block_vmem_bytes(bb, V, D, dim_ff) > vmem_budget:
        bb -= 1
    return bb


def prepare_params(params, matmul_dtype=jnp.bfloat16):
    """One-time host-side prep: fuse Q/K/V weights and cast weights to bf16.
    Hoisted out of the per-call path."""
    (wq, bq, wk, bk, wv, bv, wo, bo, w1, b1, w2, b2, g1, be1, g2, be2) = params
    f32 = jnp.float32
    wqkv = jnp.concatenate([wq, wk, wv], axis=1).astype(matmul_dtype)  # (D, 3D)
    bqkv = jnp.concatenate([bq, bk, bv], axis=1).astype(f32)           # (1, 3D)
    return (wqkv, bqkv,
            wo.astype(matmul_dtype), bo.astype(f32),
            w1.astype(matmul_dtype), b1.astype(f32),
            w2.astype(matmul_dtype), b2.astype(f32),
            g1.astype(f32), be1.astype(f32), g2.astype(f32), be2.astype(f32))


def inverted_transformer_block(x, prepared, *, num_heads, block_batch=None,
                               max_rows=512):
    B, V, D = x.shape
    (wqkv, bqkv, wo, bo, w1, b1, w2, b2, g1, be1, g2, be2) = prepared
    dim_ff = w1.shape[1]
    mm_dtype = wqkv.dtype

    bb = block_batch if block_batch is not None else _pick_block_batch(
        B, V, D, dim_ff, max_rows=max_rows)

    # Pad the batch up to a multiple of bb (masked-tail equivalent) instead of
    # degrading to tiny blocks when B is awkward; zero rows are harmless.
    Bp = -(-B // bb) * bb
    if Bp != B:
        x_in = jnp.concatenate(
            [x, jnp.zeros((Bp - B, V, D), x.dtype)], axis=0)
    else:
        x_in = x

    est = _block_vmem_bytes(bb, V, D, dim_ff)
    vmem_limit = int(min(max(2 * est, 32 << 20), 64 << 20))

    full2d = lambda a: pl.BlockSpec(a.shape, lambda b: (0, 0))
    in_specs = [
        pl.BlockSpec((bb, V, D), lambda b: (b, 0, 0)),   # x: bb batch rows / step
        full2d(wqkv), full2d(bqkv), full2d(wo), full2d(bo),
        full2d(w1), full2d(b1), full2d(w2), full2d(b2),
        full2d(g1), full2d(be1), full2d(g2), full2d(be2),
    ]

    out = pl.pallas_call(
        partial(_itb_kernel, num_heads=num_heads),
        out_shape=jax.ShapeDtypeStruct((Bp, V, D), x.dtype),
        grid_spec=pltpu.PrefetchScalarGridSpec(
            num_scalar_prefetch=0,
            grid=(Bp // bb,),
            in_specs=in_specs,
            out_specs=pl.BlockSpec((bb, V, D), lambda b: (b, 0, 0)),
            scratch_shapes=[pltpu.VMEM((bb * V, D), mm_dtype)],  # per-head attn slab
        ),
        compiler_params=pltpu.CompilerParams(
            dimension_semantics=("parallel",),
            vmem_limit_bytes=vmem_limit),
    )(x_in, wqkv, bqkv, wo, bo, w1, b1, w2, b2, g1, be1, g2, be2)

    return out[:B] if Bp != B else out


def _init_params(key, d_model, num_heads, dim_ff):
    """Deterministic parameter init (uniform, like PyTorch Linear default scale)."""
    ks = jax.random.split(key, 12)

    def lin(kw, kb, fan_in, fan_out):
        bound = 1.0 / jnp.sqrt(fan_in)
        w = jax.random.uniform(kw, (fan_in, fan_out), jnp.float32, -bound, bound)
        b = jax.random.uniform(kb, (1, fan_out), jnp.float32, -bound, bound)
        return w, b

    wq, bq = lin(ks[0], ks[1], d_model, d_model)
    wk, bk = lin(ks[2], ks[3], d_model, d_model)
    wv, bv = lin(ks[4], ks[5], d_model, d_model)
    wo, bo = lin(ks[6], ks[7], d_model, d_model)
    w1, b1 = lin(ks[8], ks[9], d_model, dim_ff)
    w2, b2 = lin(ks[10], ks[11], dim_ff, d_model)
    g1 = jnp.ones((1, d_model), jnp.float32)
    be1 = jnp.zeros((1, d_model), jnp.float32)
    g2 = jnp.ones((1, d_model), jnp.float32)
    be2 = jnp.zeros((1, d_model), jnp.float32)
    return (wq, bq, wk, bk, wv, bv, wo, bo, w1, b1, w2, b2, g1, be1, g2, be2)


def _reference(x, params, num_heads):
    """Pure-JAX f32 reference mirroring the PyTorch forward (eval mode)."""
    (wq, bq, wk, bk, wv, bv, wo, bo, w1, b1, w2, b2, g1, be1, g2, be2) = params
    B, V, D = x.shape
    hd = D // num_heads

    q = x @ wq + bq
    k = x @ wk + bk
    v = x @ wv + bv
    q = q.reshape(B, V, num_heads, hd).transpose(0, 2, 1, 3)
    k = k.reshape(B, V, num_heads, hd).transpose(0, 2, 1, 3)
    v = v.reshape(B, V, num_heads, hd).transpose(0, 2, 1, 3)
    s = jnp.einsum('bhqd,bhkd->bhqk', q, k) / jnp.sqrt(jnp.float32(hd))
    p = jax.nn.softmax(s, axis=-1)
    a = jnp.einsum('bhqk,bhkd->bhqd', p, v).transpose(0, 2, 1, 3).reshape(B, V, D)
    attn_out = a @ wo + bo

    def ln(y, g, b):
        mu = jnp.mean(y, axis=-1, keepdims=True)
        var = jnp.mean((y - mu) ** 2, axis=-1, keepdims=True)
        return (y - mu) * jax.lax.rsqrt(var + 1e-5) * g + b

    x1 = ln(x + attn_out, g1, be1)
    f = jnp.maximum(x1 @ w1 + b1, 0.0) @ w2 + b2
    return ln(x1 + f, g2, be2)


if __name__ == "__main__":
    # batch, variate_num, d_model, heads, dim_ff (small, consistent with module)
    B, V, D, H, FF = 4, 8, 32, 4, 64

    key = jax.random.PRNGKey(0)
    kx, kp = jax.random.split(key)
    x = jax.random.normal(kx, (B, V, D), jnp.float32)
    params = _init_params(kp, D, H, FF)

    # Hoisted, one-time: QKV fusion + bf16 weight cast.
    prepared = prepare_params(params, matmul_dtype=jnp.bfloat16)

    out = inverted_transformer_block(x, prepared, num_heads=H)
    out = jax.block_until_ready(out)

    ref = _reference(x, params, H)
    assert out.shape == (B, V, D)
    # Tolerance accounts for bf16 matmul operands (f32 accumulation) and the
    # EUP approximate reciprocal in the softmax denominator.
    assert jnp.allclose(out, ref, rtol=5e-2, atol=5e-2), "mismatch vs reference"

    print("KERNEL_OK")
</pallas_src>

<mosaic_0001>
module attributes {stable_mosaic.version = 11 : i64} {
  func.func @_itb_kernel(%arg0: i32, %arg1: memref<2x8x32xf32, #tpu.memory_space<vmem>>, %arg2: memref<32x96xbf16, #tpu.memory_space<vmem>>, %arg3: memref<1x96xf32, #tpu.memory_space<vmem>>, %arg4: memref<32x32xbf16, #tpu.memory_space<vmem>>, %arg5: memref<1x32xf32, #tpu.memory_space<vmem>>, %arg6: memref<32x64xbf16, #tpu.memory_space<vmem>>, %arg7: memref<1x64xf32, #tpu.memory_space<vmem>>, %arg8: memref<64x32xbf16, #tpu.memory_space<vmem>>, %arg9: memref<1x32xf32, #tpu.memory_space<vmem>>, %arg10: memref<1x32xf32, #tpu.memory_space<vmem>>, %arg11: memref<1x32xf32, #tpu.memory_space<vmem>>, %arg12: memref<1x32xf32, #tpu.memory_space<vmem>>, %arg13: memref<1x32xf32, #tpu.memory_space<vmem>>, %arg14: memref<2x8x32xf32, #tpu.memory_space<vmem>>, %arg15: memref<16x32xbf16, #tpu.memory_space<vmem>>) attributes {dimension_semantics = [#tpu.dimension_semantics<parallel>], iteration_bounds = array<i64: 2>, scalar_prefetch = 0 : i64, scratch_operands = 1 : i64, tpu.core_type = #tpu.core_type<tc>, window_params = [{transform_indices = @transform_0, window_bounds = array<i64: 2, 8, 32>}, {pipeline_mode = #tpu.pipeline_mode<synchronous>, transform_indices = @transform_1, window_bounds = array<i64: 32, 96>}, {pipeline_mode = #tpu.pipeline_mode<synchronous>, transform_indices = @transform_2, window_bounds = array<i64: 1, 96>}, {pipeline_mode = #tpu.pipeline_mode<synchronous>, transform_indices = @transform_3, window_bounds = array<i64: 32, 32>}, {pipeline_mode = #tpu.pipeline_mode<synchronous>, transform_indices = @transform_4, window_bounds = array<i64: 1, 32>}, {pipeline_mode = #tpu.pipeline_mode<synchronous>, transform_indices = @transform_5, window_bounds = array<i64: 32, 64>}, {pipeline_mode = #tpu.pipeline_mode<synchronous>, transform_indices = @transform_6, window_bounds = array<i64: 1, 64>}, {pipeline_mode = #tpu.pipeline_mode<synchronous>, transform_indices = @transform_7, window_bounds = array<i64: 64, 32>}, {pipeline_mode = #tpu.pipeline_mode<synchronous>, transform_indices = @transform_8, window_bounds = array<i64: 1, 32>}, {pipeline_mode = #tpu.pipeline_mode<synchronous>, transform_indices = @transform_9, window_bounds = array<i64: 1, 32>}, {pipeline_mode = #tpu.pipeline_mode<synchronous>, transform_indices = @transform_10, window_bounds = array<i64: 1, 32>}, {pipeline_mode = #tpu.pipeline_mode<synchronous>, transform_indices = @transform_11, window_bounds = array<i64: 1, 32>}, {pipeline_mode = #tpu.pipeline_mode<synchronous>, transform_indices = @transform_12, window_bounds = array<i64: 1, 32>}, {transform_indices = @transform_13, window_bounds = array<i64: 2, 8, 32>}]} {
    %c0 = arith.constant 0 : index
    %c0_0 = arith.constant 0 : index
    %c0_1 = arith.constant 0 : index
    %0 = vector.load %arg1[%c0, %c0_0, %c0_1] : memref<2x8x32xf32, #tpu.memory_space<vmem>>, vector<2x8x32xf32>
    %1 = vector.shape_cast %0 : vector<2x8x32xf32> to vector<16x32xf32>
    %2 = arith.truncf %1 : vector<16x32xf32> to vector<16x32xbf16>
    %c0_2 = arith.constant 0 : index
    %c0_3 = arith.constant 0 : index
    %3 = vector.load %arg2[%c0_2, %c0_3] : memref<32x96xbf16, #tpu.memory_space<vmem>>, vector<32x96xbf16>
    %cst = arith.constant dense<0.000000e+00> : vector<16x96xf32>
    %4 = tpu.matmul %2, %3, %cst {dimension_numbers = #tpu.dot_dimension_numbers<[1], [0], [0], [1], [0, 0, 1, 1], [], []>} : vector<16x32xbf16>, vector<32x96xbf16>, vector<16x96xf32> -> vector<16x96xf32>
    %c0_4 = arith.constant 0 : index
    %c0_5 = arith.constant 0 : index
    %5 = vector.load %arg3[%c0_4, %c0_5] : memref<1x96xf32, #tpu.memory_space<vmem>>, vector<1x96xf32>
    %6 = vector.broadcast %5 : vector<1x96xf32> to vector<16x96xf32>
    %7 = arith.addf %4, %6 : vector<16x96xf32>
    %8 = vector.extract_strided_slice %7 {offsets = [0, 0], sizes = [16, 8], strides = [1, 1]} : vector<16x96xf32> to vector<16x8xf32>
    %9 = vector.shape_cast %8 : vector<16x8xf32> to vector<2x8x8xf32>
    %10 = arith.truncf %9 : vector<2x8x8xf32> to vector<2x8x8xbf16>
    %11 = vector.extract_strided_slice %7 {offsets = [0, 32], sizes = [16, 8], strides = [1, 1]} : vector<16x96xf32> to vector<16x8xf32>
    %12 = vector.shape_cast %11 : vector<16x8xf32> to vector<2x8x8xf32>
    %13 = arith.truncf %12 : vector<2x8x8xf32> to vector<2x8x8xbf16>
    %14 = vector.extract_strided_slice %7 {offsets = [0, 64], sizes = [16, 8], strides = [1, 1]} : vector<16x96xf32> to vector<16x8xf32>
    %15 = vector.shape_cast %14 : vector<16x8xf32> to vector<2x8x8xf32>
    %16 = arith.truncf %15 : vector<2x8x8xf32> to vector<2x8x8xbf16>
    "tpu.trace_start"() <{level = 10 : i32, message = "bqd,bkd->bqk"}> : () -> ()
    %cst_6 = arith.constant dense<0.000000e+00> : vector<2x8x8xf32>
    %17 = tpu.matmul %10, %13, %cst_6 {dimension_numbers = #tpu.dot_dimension_numbers<[2], [2], [1], [1], [0, 0, 0, 1, 1, 1], [0], [0]>} : vector<2x8x8xbf16>, vector<2x8x8xbf16>, vector<2x8x8xf32> -> vector<2x8x8xf32>
    "tpu.trace_stop"() : () -> ()
    %cst_7 = arith.constant 0.353553385 : f32
    %18 = vector.broadcast %cst_7 : f32 to vector<2x8x8xf32>
    %19 = arith.mulf %17, %18 : vector<2x8x8xf32>
    %cst_8 = arith.constant dense<0xFF800000> : vector<2x8xf32>
    %20 = vector.multi_reduction <maximumf>, %19, %cst_8 [2] : vector<2x8x8xf32> to vector<2x8xf32>
    %21 = vector.shape_cast %20 : vector<2x8xf32> to vector<2x8x1xf32>
    %22 = vector.broadcast %21 : vector<2x8x1xf32> to vector<2x8x8xf32>
    %23 = arith.subf %19, %22 : vector<2x8x8xf32>
    %24 = math.exp %23 : vector<2x8x8xf32>
    %cst_9 = arith.constant dense<0.000000e+00> : vector<2x8xf32>
    %25 = vector.multi_reduction <add>, %24, %cst_9 [2] : vector<2x8x8xf32> to vector<2x8xf32>
    %26 = vector.shape_cast %25 : vector<2x8xf32> to vector<2x8x1xf32>
    %27 = tpu.reciprocal %26 {approx = true} : vector<2x8x1xf32> -> vector<2x8x1xf32>
    %28 = vector.broadcast %27 : vector<2x8x1xf32> to vector<2x8x8xf32>
    %29 = arith.mulf %24, %28 : vector<2x8x8xf32>
    %30 = arith.truncf %29 : vector<2x8x8xf32> to vector<2x8x8xbf16>
    "tpu.trace_start"() <{level = 10 : i32, message = "bqk,bkd->bqd"}> : () -> ()
    %cst_10 = arith.constant dense<0.000000e+00> : vector<2x8x8xf32>
    %31 = tpu.matmul %30, %16, %cst_10 {dimension_numbers = #tpu.dot_dimension_numbers<[2], [1], [1], [2], [0, 0, 0, 1, 1, 2], [0], [0]>} : vector<2x8x8xbf16>, vector<2x8x8xbf16>, vector<2x8x8xf32> -> vector<2x8x8xf32>
    "tpu.trace_stop"() : () -> ()
    %32 = vector.shape_cast %31 : vector<2x8x8xf32> to vector<16x8xf32>
    %33 = arith.truncf %32 : vector<16x8xf32> to vector<16x8xbf16>
    %c0_11 = arith.constant 0 : index
    %c0_12 = arith.constant 0 : index
    %34 = vector.load %arg15[%c0_11, %c0_12] : memref<16x32xbf16, #tpu.memory_space<vmem>>, vector<16x8xbf16>
    tpu.vector_store %arg15[%c0_11, %c0_12], %33 {strides = array<i32>} : memref<16x32xbf16, #tpu.memory_space<vmem>>, vector<16x8xbf16>,
    %35 = vector.extract_strided_slice %7 {offsets = [0, 8], sizes = [16, 8], strides = [1, 1]} : vector<16x96xf32> to vector<16x8xf32>
    %36 = vector.shape_cast %35 : vector<16x8xf32> to vector<2x8x8xf32>
    %37 = arith.truncf %36 : vector<2x8x8xf32> to vector<2x8x8xbf16>
    %38 = vector.extract_strided_slice %7 {offsets = [0, 40], sizes = [16, 8], strides = [1, 1]} : vector<16x96xf32> to vector<16x8xf32>
    %39 = vector.shape_cast %38 : vector<16x8xf32> to vector<2x8x8xf32>
    %40 = arith.truncf %39 : vector<2x8x8xf32> to vector<2x8x8xbf16>
    %41 = vector.extract_strided_slice %7 {offsets = [0, 72], sizes = [16, 8], strides = [1, 1]} : vector<16x96xf32> to vector<16x8xf32>
    %42 = vector.shape_cast %41 : vector<16x8xf32> to vector<2x8x8xf32>
    %43 = arith.truncf %42 : vector<2x8x8xf32> to vector<2x8x8xbf16>
    "tpu.trace_start"() <{level = 10 : i32, message = "bqd,bkd->bqk"}> : () -> ()
    %cst_13 = arith.constant dense<0.000000e+00> : vector<2x8x8xf32>
    %44 = tpu.matmul %37, %40, %cst_13 {dimension_numbers = #tpu.dot_dimension_numbers<[2], [2], [1], [1], [0, 0, 0, 1, 1, 1], [0], [0]>} : vector<2x8x8xbf16>, vector<2x8x8xbf16>, vector<2x8x8xf32> -> vector<2x8x8xf32>
    "tpu.trace_stop"() : () -> ()
    %cst_14 = arith.constant 0.353553385 : f32
    %45 = vector.broadcast %cst_14 : f32 to vector<2x8x8xf32>
    %46 = arith.mulf %44, %45 : vector<2x8x8xf32>
    %cst_15 = arith.constant dense<0xFF800000> : vector<2x8xf32>
    %47 = vector.multi_reduction <maximumf>, %46, %cst_15 [2] : vector<2x8x8xf32> to vector<2x8xf32>
    %48 = vector.shape_cast %47 : vector<2x8xf32> to vector<2x8x1xf32>
    %49 = vector.broadcast %48 : vector<2x8x1xf32> to vector<2x8x8xf32>
    %50 = arith.subf %46, %49 : vector<2x8x8xf32>
    %51 = math.exp %50 : vector<2x8x8xf32>
    %cst_16 = arith.constant dense<0.000000e+00> : vector<2x8xf32>
    %52 = vector.multi_reduction <add>, %51, %cst_16 [2] : vector<2x8x8xf32> to vector<2x8xf32>
    %53 = vector.shape_cast %52 : vector<2x8xf32> to vector<2x8x1xf32>
    %54 = tpu.reciprocal %53 {approx = true} : vector<2x8x1xf32> -> vector<2x8x1xf32>
    %55 = vector.broadcast %54 : vector<2x8x1xf32> to vector<2x8x8xf32>
    %56 = arith.mulf %51, %55 : vector<2x8x8xf32>
    %57 = arith.truncf %56 : vector<2x8x8xf32> to vector<2x8x8xbf16>
    "tpu.trace_start"() <{level = 10 : i32, message = "bqk,bkd->bqd"}> : () -> ()
    %cst_17 = arith.constant dense<0.000000e+00> : vector<2x8x8xf32>
    %58 = tpu.matmul %57, %43, %cst_17 {dimension_numbers = #tpu.dot_dimension_numbers<[2], [1], [1], [2], [0, 0, 0, 1, 1, 2], [0], [0]>} : vector<2x8x8xbf16>, vector<2x8x8xbf16>, vector<2x8x8xf32> -> vector<2x8x8xf32>
    "tpu.trace_stop"() : () -> ()
    %59 = vector.shape_cast %58 : vector<2x8x8xf32> to vector<16x8xf32>
    %60 = arith.truncf %59 : vector<16x8xf32> to vector<16x8xbf16>
    %c0_18 = arith.constant 0 : index
    %c8 = arith.constant 8 : index
    %61 = vector.load %arg15[%c0_18, %c8] : memref<16x32xbf16, #tpu.memory_space<vmem>>, vector<16x8xbf16>
    tpu.vector_store %arg15[%c0_18, %c8], %60 {strides = array<i32>} : memref<16x32xbf16, #tpu.memory_space<vmem>>, vector<16x8xbf16>,
    %62 = vector.extract_strided_slice %7 {offsets = [0, 16], sizes = [16, 8], strides = [1, 1]} : vector<16x96xf32> to vector<16x8xf32>
    %63 = vector.shape_cast %62 : vector<16x8xf32> to vector<2x8x8xf32>
    %64 = arith.truncf %63 : vector<2x8x8xf32> to vector<2x8x8xbf16>
    %65 = vector.extract_strided_slice %7 {offsets = [0, 48], sizes = [16, 8], strides = [1, 1]} : vector<16x96xf32> to vector<16x8xf32>
    %66 = vector.shape_cast %65 : vector<16x8xf32> to vector<2x8x8xf32>
    %67 = arith.truncf %66 : vector<2x8x8xf32> to vector<2x8x8xbf16>
    %68 = vector.extract_strided_slice %7 {offsets = [0, 80], sizes = [16, 8], strides = [1, 1]} : vector<16x96xf32> to vector<16x8xf32>
    %69 = vector.shape_cast %68 : vector<16x8xf32> to vector<2x8x8xf32>
    %70 = arith.truncf %69 : vector<2x8x8xf32> to vector<2x8x8xbf16>
    "tpu.trace_start"() <{level = 10 : i32, message = "bqd,bkd->bqk"}> : () -> ()
    %cst_19 = arith.constant dense<0.000000e+00> : vector<2x8x8xf32>
    %71 = tpu.matmul %64, %67, %cst_19 {dimension_numbers = #tpu.dot_dimension_numbers<[2], [2], [1], [1], [0, 0, 0, 1, 1, 1], [0], [0]>} : vector<2x8x8xbf16>, vector<2x8x8xbf16>, vector<2x8x8xf32> -> vector<2x8x8xf32>
    "tpu.trace_stop"() : () -> ()
    %cst_20 = arith.constant 0.353553385 : f32
    %72 = vector.broadcast %cst_20 : f32 to vector<2x8x8xf32>
    %73 = arith.mulf %71, %72 : vector<2x8x8xf32>
    %cst_21 = arith.constant dense<0xFF800000> : vector<2x8xf32>
    %74 = vector.multi_reduction <maximumf>, %73, %cst_21 [2] : vector<2x8x8xf32> to vector<2x8xf32>
    %75 = vector.shape_cast %74 : vector<2x8xf32> to vector<2x8x1xf32>
    %76 = vector.broadcast %75 : vector<2x8x1xf32> to vector<2x8x8xf32>
    %77 = arith.subf %73, %76 : vector<2x8x8xf32>
    %78 = math.exp %77 : vector<2x8x8xf32>
    %cst_22 = arith.constant dense<0.000000e+00> : vector<2x8xf32>
    %79 = vector.multi_reduction <add>, %78, %cst_22 [2] : vector<2x8x8xf32> to vector<2x8xf32>
    %80 = vector.shape_cast %79 : vector<2x8xf32> to vector<2x8x1xf32>
    %81 = tpu.reciprocal %80 {approx = true} : vector<2x8x1xf32> -> vector<2x8x1xf32>
    %82 = vector.broadcast %81 : vector<2x8x1xf32> to vector<2x8x8xf32>
    %83 = arith.mulf %78, %82 : vector<2x8x8xf32>
    %84 = arith.truncf %83 : vector<2x8x8xf32> to vector<2x8x8xbf16>
    "tpu.trace_start"() <{level = 10 : i32, message = "bqk,bkd->bqd"}> : () -> ()
    %cst_23 = arith.constant dense<0.000000e+00> : vector<2x8x8xf32>
    %85 = tpu.matmul %84, %70, %cst_23 {dimension_numbers = #tpu.dot_dimension_numbers<[2], [1], [1], [2], [0, 0, 0, 1, 1, 2], [0], [0]>} : vector<2x8x8xbf16>, vector<2x8x8xbf16>, vector<2x8x8xf32> -> vector<2x8x8xf32>
    "tpu.trace_stop"() : () -> ()
    %86 = vector.shape_cast %85 : vector<2x8x8xf32> to vector<16x8xf32>
    %87 = arith.truncf %86 : vector<16x8xf32> to vector<16x8xbf16>
    %c0_24 = arith.constant 0 : index
    %c16 = arith.constant 16 : index
    %88 = vector.load %arg15[%c0_24, %c16] : memref<16x32xbf16, #tpu.memory_space<vmem>>, vector<16x8xbf16>
    tpu.vector_store %arg15[%c0_24, %c16], %87 {strides = array<i32>} : memref<16x32xbf16, #tpu.memory_space<vmem>>, vector<16x8xbf16>,
    %89 = vector.extract_strided_slice %7 {offsets = [0, 24], sizes = [16, 8], strides = [1, 1]} : vector<16x96xf32> to vector<16x8xf32>
    %90 = vector.shape_cast %89 : vector<16x8xf32> to vector<2x8x8xf32>
    %91 = arith.truncf %90 : vector<2x8x8xf32> to vector<2x8x8xbf16>
    %92 = vector.extract_strided_slice %7 {offsets = [0, 56], sizes = [16, 8], strides = [1, 1]} : vector<16x96xf32> to vector<16x8xf32>
    %93 = vector.shape_cast %92 : vector<16x8xf32> to vector<2x8x8xf32>
    %94 = arith.truncf %93 : vector<2x8x8xf32> to vector<2x8x8xbf16>
    %95 = vector.extract_strided_slice %7 {offsets = [0, 88], sizes = [16, 8], strides = [1, 1]} : vector<16x96xf32> to vector<16x8xf32>
    %96 = vector.shape_cast %95 : vector<16x8xf32> to vector<2x8x8xf32>
    %97 = arith.truncf %96 : vector<2x8x8xf32> to vector<2x8x8xbf16>
    "tpu.trace_start"() <{level = 10 : i32, message = "bqd,bkd->bqk"}> : () -> ()
    %cst_25 = arith.constant dense<0.000000e+00> : vector<2x8x8xf32>
    %98 = tpu.matmul %91, %94, %cst_25 {dimension_numbers = #tpu.dot_dimension_numbers<[2], [2], [1], [1], [0, 0, 0, 1, 1, 1], [0], [0]>} : vector<2x8x8xbf16>, vector<2x8x8xbf16>, vector<2x8x8xf32> -> vector<2x8x8xf32>
    "tpu.trace_stop"() : () -> ()
    %cst_26 = arith.constant 0.353553385 : f32
    %99 = vector.broadcast %cst_26 : f32 to vector<2x8x8xf32>
    %100 = arith.mulf %98, %99 : vector<2x8x8xf32>
    %cst_27 = arith.constant dense<0xFF800000> : vector<2x8xf32>
    %101 = vector.multi_reduction <maximumf>, %100, %cst_27 [2] : vector<2x8x8xf32> to vector<2x8xf32>
    %102 = vector.shape_cast %101 : vector<2x8xf32> to vector<2x8x1xf32>
    %103 = vector.broadcast %102 : vector<2x8x1xf32> to vector<2x8x8xf32>
    %104 = arith.subf %100, %103 : vector<2x8x8xf32>
    %105 = math.exp %104 : vector<2x8x8xf32>
    %cst_28 = arith.constant dense<0.000000e+00> : vector<2x8xf32>
    %106 = vector.multi_reduction <add>, %105, %cst_28 [2] : vector<2x8x8xf32> to vector<2x8xf32>
    %107 = vector.shape_cast %106 : vector<2x8xf32> to vector<2x8x1xf32>
    %108 = tpu.reciprocal %107 {approx = true} : vector<2x8x1xf32> -> vector<2x8x1xf32>
    %109 = vector.broadcast %108 : vector<2x8x1xf32> to vector<2x8x8xf32>
    %110 = arith.mulf %105, %109 : vector<2x8x8xf32>
    %111 = arith.truncf %110 : vector<2x8x8xf32> to vector<2x8x8xbf16>
    "tpu.trace_start"() <{level = 10 : i32, message = "bqk,bkd->bqd"}> : () -> ()
    %cst_29 = arith.constant dense<0.000000e+00> : vector<2x8x8xf32>
    %112 = tpu.matmul %111, %97, %cst_29 {dimension_numbers = #tpu.dot_dimension_numbers<[2], [1], [1], [2], [0, 0, 0, 1, 1, 2], [0], [0]>} : vector<2x8x8xbf16>, vector<2x8x8xbf16>, vector<2x8x8xf32> -> vector<2x8x8xf32>
    "tpu.trace_stop"() : () -> ()
    %113 = vector.shape_cast %112 : vector<2x8x8xf32> to vector<16x8xf32>
    %114 = arith.truncf %113 : vector<16x8xf32> to vector<16x8xbf16>
    %c0_30 = arith.constant 0 : index
    %c24 = arith.constant 24 : index
    %115 = vector.load %arg15[%c0_30, %c24] : memref<16x32xbf16, #tpu.memory_space<vmem>>, vector<16x8xbf16>
    tpu.vector_store %arg15[%c0_30, %c24], %114 {strides = array<i32>} : memref<16x32xbf16, #tpu.memory_space<vmem>>, vector<16x8xbf16>,
    %c0_31 = arith.constant 0 : index
    %c0_32 = arith.constant 0 : index
    %116 = vector.load %arg15[%c0_31, %c0_32] : memref<16x32xbf16, #tpu.memory_space<vmem>>, vector<16x32xbf16>
    %c0_33 = arith.constant 0 : index
    %c0_34 = arith.constant 0 : index
    %117 = vector.load %arg4[%c0_33, %c0_34] : memref<32x32xbf16, #tpu.memory_space<vmem>>, vector<32x32xbf16>
    %cst_35 = arith.constant dense<0.000000e+00> : vector<16x32xf32>
    %118 = tpu.matmul %116, %117, %cst_35 {dimension_numbers = #tpu.dot_dimension_numbers<[1], [0], [0], [1], [0, 0, 1, 1], [], []>} : vector<16x32xbf16>, vector<32x32xbf16>, vector<16x32xf32> -> vector<16x32xf32>
    %c0_36 = arith.constant 0 : index
    %c0_37 = arith.constant 0 : index
    %119 = vector.load %arg5[%c0_36, %c0_37] : memref<1x32xf32, #tpu.memory_space<vmem>>, vector<1x32xf32>
    %120 = vector.broadcast %119 : vector<1x32xf32> to vector<16x32xf32>
    %121 = arith.addf %118, %120 : vector<16x32xf32>
    %122 = arith.addf %1, %121 : vector<16x32xf32>
    %c0_38 = arith.constant 0 : index
    %c0_39 = arith.constant 0 : index
    %123 = vector.load %arg10[%c0_38, %c0_39] : memref<1x32xf32, #tpu.memory_space<vmem>>, vector<1x32xf32>
    %c0_40 = arith.constant 0 : index
    %c0_41 = arith.constant 0 : index
    %124 = vector.load %arg11[%c0_40, %c0_41] : memref<1x32xf32, #tpu.memory_space<vmem>>, vector<1x32xf32>
    %cst_42 = arith.constant dense<0.000000e+00> : vector<16xf32>
    %125 = vector.multi_reduction <add>, %122, %cst_42 [1] : vector<16x32xf32> to vector<16xf32>
    %126 = vector.shape_cast %125 : vector<16xf32> to vector<16x1xf32>
    %127 = arith.mulf %122, %122 : vector<16x32xf32>
    %cst_43 = arith.constant dense<0.000000e+00> : vector<16xf32>
    %128 = vector.multi_reduction <add>, %127, %cst_43 [1] : vector<16x32xf32> to vector<16xf32>
    %129 = vector.shape_cast %128 : vector<16xf32> to vector<16x1xf32>
    %cst_44 = arith.constant 3.125000e-02 : f32
    %130 = vector.broadcast %cst_44 : f32 to vector<16x1xf32>
    %131 = arith.mulf %126, %130 : vector<16x1xf32>
    %cst_45 = arith.constant 3.125000e-02 : f32
    %132 = vector.broadcast %cst_45 : f32 to vector<16x1xf32>
    %133 = arith.mulf %129, %132 : vector<16x1xf32>
    %134 = arith.mulf %131, %131 : vector<16x1xf32>
    %135 = arith.subf %133, %134 : vector<16x1xf32>
    %cst_46 = arith.constant 0.000000e+00 : f32
    %136 = vector.broadcast %cst_46 : f32 to vector<16x1xf32>
    %137 = arith.maximumf %135, %136 : vector<16x1xf32>
    %138 = vector.broadcast %131 : vector<16x1xf32> to vector<16x32xf32>
    %139 = arith.subf %122, %138 : vector<16x32xf32>
    %cst_47 = arith.constant 9.99999974E-6 : f32
    %140 = vector.broadcast %cst_47 : f32 to vector<16x1xf32>
    %141 = arith.addf %137, %140 : vector<16x1xf32>
    %142 = math.rsqrt %141 : vector<16x1xf32>
    %143 = vector.broadcast %142 : vector<16x1xf32> to vector<16x32xf32>
    %144 = arith.mulf %139, %143 : vector<16x32xf32>
    %145 = vector.broadcast %123 : vector<1x32xf32> to vector<16x32xf32>
    %146 = arith.mulf %144, %145 : vector<16x32xf32>
    %147 = vector.broadcast %124 : vector<1x32xf32> to vector<16x32xf32>
    %148 = arith.addf %146, %147 : vector<16x32xf32>
    %149 = arith.truncf %148 : vector<16x32xf32> to vector<16x32xbf16>
    %c0_48 = arith.constant 0 : index
    %c0_49 = arith.constant 0 : index
    %150 = vector.load %arg6[%c0_48, %c0_49] : memref<32x64xbf16, #tpu.memory_space<vmem>>, vector<32x64xbf16>
    %cst_50 = arith.constant dense<0.000000e+00> : vector<16x64xf32>
    %151 = tpu.matmul %149, %150, %cst_50 {dimension_numbers = #tpu.dot_dimension_numbers<[1], [0], [0], [1], [0, 0, 1, 1], [], []>} : vector<16x32xbf16>, vector<32x64xbf16>, vector<16x64xf32> -> vector<16x64xf32>
    %c0_51 = arith.constant 0 : index
    %c0_52 = arith.constant 0 : index
    %152 = vector.load %arg7[%c0_51, %c0_52] : memref<1x64xf32, #tpu.memory_space<vmem>>, vector<1x64xf32>
    %153 = vector.broadcast %152 : vector<1x64xf32> to vector<16x64xf32>
    %154 = arith.addf %151, %153 : vector<16x64xf32>
    %cst_53 = arith.constant 0.000000e+00 : f32
    %155 = vector.broadcast %cst_53 : f32 to vector<16x64xf32>
    %156 = arith.maximumf %154, %155 : vector<16x64xf32>
    %157 = arith.truncf %156 : vector<16x64xf32> to vector<16x64xbf16>
    %c0_54 = arith.constant 0 : index
    %c0_55 = arith.constant 0 : index
    %158 = vector.load %arg8[%c0_54, %c0_55] : memref<64x32xbf16, #tpu.memory_space<vmem>>, vector<64x32xbf16>
    %cst_56 = arith.constant dense<0.000000e+00> : vector<16x32xf32>
    %159 = tpu.matmul %157, %158, %cst_56 {dimension_numbers = #tpu.dot_dimension_numbers<[1], [0], [0], [1], [0, 0, 1, 1], [], []>} : vector<16x64xbf16>, vector<64x32xbf16>, vector<16x32xf32> -> vector<16x32xf32>
    %c0_57 = arith.constant 0 : index
    %c0_58 = arith.constant 0 : index
    %160 = vector.load %arg9[%c0_57, %c0_58] : memref<1x32xf32, #tpu.memory_space<vmem>>, vector<1x32xf32>
    %161 = vector.broadcast %160 : vector<1x32xf32> to vector<16x32xf32>
    %162 = arith.addf %159, %161 : vector<16x32xf32>
    %163 = arith.addf %148, %162 : vector<16x32xf32>
    %c0_59 = arith.constant 0 : index
    %c0_60 = arith.constant 0 : index
    %164 = vector.load %arg12[%c0_59, %c0_60] : memref<1x32xf32, #tpu.memory_space<vmem>>, vector<1x32xf32>
    %c0_61 = arith.constant 0 : index
    %c0_62 = arith.constant 0 : index
    %165 = vector.load %arg13[%c0_61, %c0_62] : memref<1x32xf32, #tpu.memory_space<vmem>>, vector<1x32xf32>
    %cst_63 = arith.constant dense<0.000000e+00> : vector<16xf32>
    %166 = vector.multi_reduction <add>, %163, %cst_63 [1] : vector<16x32xf32> to vector<16xf32>
    %167 = vector.shape_cast %166 : vector<16xf32> to vector<16x1xf32>
    %168 = arith.mulf %163, %163 : vector<16x32xf32>
    %cst_64 = arith.constant dense<0.000000e+00> : vector<16xf32>
    %169 = vector.multi_reduction <add>, %168, %cst_64 [1] : vector<16x32xf32> to vector<16xf32>
    %170 = vector.shape_cast %169 : vector<16xf32> to vector<16x1xf32>
    %cst_65 = arith.constant 3.125000e-02 : f32
    %171 = vector.broadcast %cst_65 : f32 to vector<16x1xf32>
    %172 = arith.mulf %167, %171 : vector<16x1xf32>
    %cst_66 = arith.constant 3.125000e-02 : f32
    %173 = vector.broadcast %cst_66 : f32 to vector<16x1xf32>
    %174 = arith.mulf %170, %173 : vector<16x1xf32>
    %175 = arith.mulf %172, %172 : vector<16x1xf32>
    %176 = arith.subf %174, %175 : vector<16x1xf32>
    %cst_67 = arith.constant 0.000000e+00 : f32
    %177 = vector.broadcast %cst_67 : f32 to vector<16x1xf32>
    %178 = arith.maximumf %176, %177 : vector<16x1xf32>
    %179 = vector.broadcast %172 : vector<16x1xf32> to vector<16x32xf32>
    %180 = arith.subf %163, %179 : vector<16x32xf32>
    %cst_68 = arith.constant 9.99999974E-6 : f32
    %181 = vector.broadcast %cst_68 : f32 to vector<16x1xf32>
    %182 = arith.addf %178, %181 : vector<16x1xf32>
    %183 = math.rsqrt %182 : vector<16x1xf32>
    %184 = vector.broadcast %183 : vector<16x1xf32> to vector<16x32xf32>
    %185 = arith.mulf %180, %184 : vector<16x32xf32>
    %186 = vector.broadcast %164 : vector<1x32xf32> to vector<16x32xf32>
    %187 = arith.mulf %185, %186 : vector<16x32xf32>
    %188 = vector.broadcast %165 : vector<1x32xf32> to vector<16x32xf32>
    %189 = arith.addf %187, %188 : vector<16x32xf32>
    %190 = vector.shape_cast %189 : vector<16x32xf32> to vector<2x8x32xf32>
    %c0_69 = arith.constant 0 : index
    %c0_70 = arith.constant 0 : index
    %c0_71 = arith.constant 0 : index
    %191 = vector.load %arg14[%c0_69, %c0_70, %c0_71] : memref<2x8x32xf32, #tpu.memory_space<vmem>>, vector<2x8x32xf32>
    tpu.vector_store %arg14[%c0_69, %c0_70, %c0_71], %190 {strides = array<i32>} : memref<2x8x32xf32, #tpu.memory_space<vmem>>, vector<2x8x32xf32>,
    return
  }
  func.func @transform_0(%arg0: i32) -> (i32, i32, i32) {
    %c0_i32 = arith.constant 0 : i32
    %c0_i32_0 = arith.constant 0 : i32
    %c0_i32_1 = arith.constant 0 : i32
    return %arg0, %c0_i32, %c0_i32_0 : i32, i32, i32
  }
  func.func @transform_1(%arg0: i32) -> (i32, i32) {
    %c0_i32 = arith.constant 0 : i32
    %c0_i32_0 = arith.constant 0 : i32
    %c0_i32_1 = arith.constant 0 : i32
    return %c0_i32, %c0_i32_0 : i32, i32
  }
  func.func @transform_2(%arg0: i32) -> (i32, i32) {
    %c0_i32 = arith.constant 0 : i32
    %c0_i32_0 = arith.constant 0 : i32
    %c0_i32_1 = arith.constant 0 : i32
    return %c0_i32, %c0_i32_0 : i32, i32
  }
  func.func @transform_3(%arg0: i32) -> (i32, i32) {
    %c0_i32 = arith.constant 0 : i32
    %c0_i32_0 = arith.constant 0 : i32
    %c0_i32_1 = arith.constant 0 : i32
    return %c0_i32, %c0_i32_0 : i32, i32
  }
  func.func @transform_4(%arg0: i32) -> (i32, i32) {
    %c0_i32 = arith.constant 0 : i32
    %c0_i32_0 = arith.constant 0 : i32
    %c0_i32_1 = arith.constant 0 : i32
    return %c0_i32, %c0_i32_0 : i32, i32
  }
  func.func @transform_5(%arg0: i32) -> (i32, i32) {
    %c0_i32 = arith.constant 0 : i32
    %c0_i32_0 = arith.constant 0 : i32
    %c0_i32_1 = arith.constant 0 : i32
    return %c0_i32, %c0_i32_0 : i32, i32
  }
  func.func @transform_6(%arg0: i32) -> (i32, i32) {
    %c0_i32 = arith.constant 0 : i32
    %c0_i32_0 = arith.constant 0 : i32
    %c0_i32_1 = arith.constant 0 : i32
    return %c0_i32, %c0_i32_0 : i32, i32
  }
  func.func @transform_7(%arg0: i32) -> (i32, i32) {
    %c0_i32 = arith.constant 0 : i32
    %c0_i32_0 = arith.constant 0 : i32
    %c0_i32_1 = arith.constant 0 : i32
    return %c0_i32, %c0_i32_0 : i32, i32
  }
  func.func @transform_8(%arg0: i32) -> (i32, i32) {
    %c0_i32 = arith.constant 0 : i32
    %c0_i32_0 = arith.constant 0 : i32
    %c0_i32_1 = arith.constant 0 : i32
    return %c0_i32, %c0_i32_0 : i32, i32
  }
  func.func @transform_9(%arg0: i32) -> (i32, i32) {
    %c0_i32 = arith.constant 0 : i32
    %c0_i32_0 = arith.constant 0 : i32
    %c0_i32_1 = arith.constant 0 : i32
    return %c0_i32, %c0_i32_0 : i32, i32
  }
  func.func @transform_10(%arg0: i32) -> (i32, i32) {
    %c0_i32 = arith.constant 0 : i32
    %c0_i32_0 = arith.constant 0 : i32
    %c0_i32_1 = arith.constant 0 : i32
    return %c0_i32, %c0_i32_0 : i32, i32
  }
  func.func @transform_11(%arg0: i32) -> (i32, i32) {
    %c0_i32 = arith.constant 0 : i32
    %c0_i32_0 = arith.constant 0 : i32
    %c0_i32_1 = arith.constant 0 : i32
    return %c0_i32, %c0_i32_0 : i32, i32
  }
  func.func @transform_12(%arg0: i32) -> (i32, i32) {
    %c0_i32 = arith.constant 0 : i32
    %c0_i32_0 = arith.constant 0 : i32
    %c0_i32_1 = arith.constant 0 : i32
    return %c0_i32, %c0_i32_0 : i32, i32
  }
  func.func @transform_13(%arg0: i32) -> (i32, i32, i32) {
    %c0_i32 = arith.constant 0 : i32
    %c0_i32_0 = arith.constant 0 : i32
    %c0_i32_1 = arith.constant 0 : i32
    return %arg0, %c0_i32, %c0_i32_0 : i32, i32, i32
  }
}

</mosaic_0001>

<bundles_post_ra>
// kernel: tpu_custom_call.1
= control target key start
LH: loop header
LB: loop body
LE: loop exit
PB: predicated region body
PF: predicated region fallthrough
CT: control target
= control target key end

     0   :  { %18 = vsyncpa [#allocation4], 0  ;;  %s2879_s0 = inlined_call_operand.vmem [shape: f32[4,8,32], index: 0, kind: input, shape index: {}]   ;;  %s2880_s1 = inlined_call_operand.vmem [shape: bf16[32,96], index: 1, kind: input, shape index: {}]   ;;  %s2881_s2 = inlined_call_operand.vmem [shape: f32[1,96], index: 2, kind: input, shape index: {}]   ;;  %s2882_s3 = inlined_call_operand.hbm [shape: bf16[32,32], index: 3, kind: input, shape index: {}]   ;;  %s2883_s4 = inlined_call_operand.vmem [shape: f32[1,32], index: 4, kind: input, shape index: {}]   ;;  %s2884_s5 = inlined_call_operand.hbm [shape: bf16[32,64], index: 5, kind: input, shape index: {}]   ;;  %s2885_s6 = inlined_call_operand.vmem [shape: f32[1,64], index: 6, kind: input, shape index: {}]   ;;  %s2886_s7 = inlined_call_operand.vmem [shape: bf16[64,32], index: 7, kind: input, shape index: {}]   ;;  %s2887_s8 = inlined_call_operand.vmem [shape: f32[1,32], index: 8, kind: input, shape index: {}]   ;;  %s2888_s9 = inlined_call_operand.vmem [shape: f32[1,32], index: 9, kind: input, shape index: {}]   ;;  %s2889_s10 = inlined_call_operand.vmem [shape: f32[1,32], index: 10, kind: input, shape index: {}]   ;;  %s2890_s11 = inlined_call_operand.vmem [shape: f32[1,32], index: 11, kind: input, shape index: {}]   ;;  %s2891_s12 = inlined_call_operand.vmem [shape: f32[1,32], index: 12, kind: input, shape index: {}]   ;;  %s2892_s13 = inlined_call_operand.hbm [shape: f32[4,8,32], index: 13, kind: output, shape index: {}]  }
   0x1   :  { %19 = vsyncpa [#allocation7], 0 }
   0x2   :  { %20 = vsyncpa [#allocation5], 0 }
   0x3   :  { %22 = vsyncpa [#allocation5 + $0x1], 0  ;;  %s2517_s25 = smov 0   ;;  %s2519_s26 = smov 0  }
   0x4   :  { %s2521_s27 = smov 0   ;;  %s2523_s28 = smov 0  }
   0x5 LB: > { %2898 = sst [smem:[#allocation12_spill]] %s2419_s27  ;;  %s2538_s29 = sadd.s32 4294967295, %s2423_s28   ;;  %s2423_s28 = sphi %s2523_s28, %s2911_s28   ;;  %s2419_s27 = sphi %s2521_s27, %s2913_s27   ;;  %s2415_s26 = sphi %s2519_s26, %s2915_s26   ;;  %s2411_s25 = sphi %s2517_s25, %s2914_s25  }
   0x6   : > { %s1923_s30 = sadd.s32 4294967294, %s2423_s28   ;;  %s2542_s14 = sadd.s32 1, %s2423_s28  }
   0x7   : > { %2899 = sst [smem:[#allocation13_spill]] %s2542_s14  ;;  %s313_s15 = sadd.s32 1, %s2419_s27 }
   0x8   : > { %s310_s16 = ssub.s32 %s2423_s28, %s2542_s14  ;;  %p323_p0 = scmp.ne.s32.totalorder %s2419_s27, %s2415_s26 }
   0x9   : > { %p311_p1 = scmp.eq.s32.totalorder %s310_s16, 0  ;;  %p324_p2 = scmp.eq.s32.totalorder %s2538_s29, 1 }
   0xa   : > { %p329_p3 = scmp.ne.s32.totalorder %s2415_s26, %s2411_s25  ;;  %p330_p4 = scmp.eq.s32.totalorder %s1923_s30, 1 }
   0xb   : > { %s2553_s17 = scalar_select %p311_p1, %s2419_s27, %s313_s15  }
   0xc   : > { %p2555_p5 = por %p324_p2, %p323_p0  ;;  %p2559_p6 = por %p330_p4, %p329_p3 }
   0xd   : > { %2900 = sst [smem:[#allocation14_spill]] %s2553_s17  ;;  %p1924_p7 = scmp.ge.s32.totalorder %s2423_s28, 1 }
   0xe   : > { %s2902_s19 = scalar_select %p2559_p6, 1, 0 }
   0xf   : > { %p337_p8 = scmp.lt.s32.totalorder %s2423_s28, 3  ;;  %p2894_p9 = scmp.eq.s32.totalorder %s2538_s29, 0 }
  0x10   : > { %s2425_s21 = smov [#allocation3]   ;;  %s2426_s24 = smov [#allocation6]  }
  0x11   : > { %p2566_p10 = pnand %p1924_p7, %p337_p8  ;;  %s355_s22 = sshll.u32 %s2425_s21, 4  ;;  %s356_s22 = int_to_ptr.vmem [resolvable:$true] %s355_s22 }
  0x12   : > { %s371_s30 = sshll.u32 %s2426_s24, 4  ;;  %s2314_s15 = scalar_lea.vmem %s356_s22, 256  ;;  %s372_s30 = int_to_ptr.vmem [resolvable:$true] %s371_s30 }
  0x13   : > { %p2183_p11 = pneg %p2566_p10  ;;  %p2315_p0 = scmp.ne.s32.totalorder %s356_s22, %s2314_s15 }
  0x14   : > { %p2322_p3 = scmp.lt.s32.totalorder %s356_s22, %s356_s22  ;;  %p2323_p4 = scmp.lt.s32.totalorder %s2314_s15, %s2314_s15 }
  0x15   : > { %p2574_p12 = pnand %p2894_p9, %p2183_p11 }
  0x16   : > { %p2324_p7 = por %p2323_p4, %p2322_p3 }
  0x17   : > { %p2305_p13 = pneg %p2574_p12 }
  0x19   : > { %p2317_p1 = pnand %p2315_p0, %p2305_p13 }
  0x1b   : > { %p2318_p2 = pneg %p2317_p1 }
  0x1d   : > { %p2325_p8 = pnand %p2324_p7, %p2318_p2 }
  0x1f   : > { %2328 = shalt.err (!%p2325_p8)
}
  0x20   : > { %s2427_s16 = smov 64   ;;  %s2428_s21 = smov 4  }
  0x21   : > { %2186 = dma.hbm_to_vmem [thread:$0]  (!%p2574_p12), %s2882_s3, 256, %s356_s22, [#allocation4], %s2427_s16, %s2427_s16, %s2428_s21  }
  0x22   : > { %s2340_s27 = scalar_lea.vmem %s372_s30, 256  ;;  %p2348_p9 = scmp.lt.s32.totalorder %s372_s30, %s372_s30 }
  0x23   : > { %p2341_p11 = scmp.ne.s32.totalorder %s372_s30, %s2340_s27  ;;  %p2349_p6 = scmp.lt.s32.totalorder %s2340_s27, %s2340_s27 }
  0x25   : > { %p2343_p0 = pnand %p2341_p11, %p2305_p13  ;;  %p2350_p3 = por %p2349_p6, %p2348_p9 }
  0x27   : > { %p2344_p1 = pneg %p2343_p0 }
  0x29   : > { %p2351_p2 = pnand %p2350_p3, %p2344_p1 }
  0x2b   : > { %2354 = shalt.err (!%p2351_p2)
}
  0x2c   : > { %2189 = dma.hbm_to_vmem [thread:$0]  (!%p2574_p12), %s2884_s5, 256, %s372_s30, [#allocation7], %s2427_s16, %s2427_s16, %s2428_s21  }
  0x2d   : > { %417 = sbr.rel (%p2566_p10) target bundleno = 3729 (0xe91), region = 72  ;;  %p2905_p4 = scmp.eq.s32.totalorder (!%p2566_p10), %s2538_s29, 0 }
  0x32   : > { %2398 = dma.done.wait (%p2905_p4), [#allocation4], 256   ;;  %p2906_p13 = pmov %p2905_p4 }
  0x33   : > { %p2907_p7 = pmov %p2905_p4 }
  0x34   : > { %2400 = vsyncadd (%p2906_p13), [#allocation4], 4294967040 }
  0x35   : > { %2402 = dma.done.wait (%p2907_p7), [#allocation7], 256   ;;  %p2908_p6 = pmov %p2905_p4 }
  0x36   : > { %s1932_s27 = sshll.u32 %s2538_s29, 1  ;;  %v2429_v0 = vmov 0.0   ;;  %vm2430_vm0 = vmmov 0   ;;  %v2252_v1 = vld [vmem:[%s2880_s1 + $0x8] sm:$0xff]   ;;  %v2253_v2 = vld [vmem:[%s2880_s1] sm:$0xff]   ;;  %vm499_vm1 = vcmask 261120  }
  0x37   : > { %2404 = vsyncadd (%p2908_p6), [#allocation7], 4294967040  ;;  %2041 = vmatprep.subr.bf16.mxu0 %v2429_v0  ;;  %2045 = vmatprep.mubr.msk.bf16.mxu0 %vm2430_vm0, %v2429_v0  ;;  %p466_p9 = scmp.lt.s32.totalorder %s1932_s27, 3  ;;  %v1934_v6 = vld [vmem:[%s2881_s2] ss:$0 sm:$0xff]  ;;  %vm549_vm2 = vcmask 64512  }
  0x38   : > { %2049 = vmatprep.subr.bf16.mxu1 %v2429_v0  ;;  %2051 = vmatprep.mubr.msk.bf16.mxu1 %vm2430_vm0, %v2429_v0  ;;  %s2433_s17 = smov 88   ;;  %vm676_vm3 = vcmask 1043456   ;;  %s2434_s20 = smov 120   ;;  %vm776_vm4 = vcmask 60416   ;;  %vm1013_vm5 = vcmask 126016   ;;  %vm1250_vm6 = vcmask 191616  }
  0x39   : > { %s2917_s27 = smov (!%p466_p9, %s1932_s27), 3  ;;  %2042 = vmatpush3.bf16.msra.mxu0 %v2252_v1  ;;  %s2436_s23 = smov 80   ;;  %vm1487_vm7 = vcmask 257216   ;;  %vm1726_vm8 = vcmask 523264  }
  0x3a   : > { %s1933_s14 = sshll.u32 %s2917_s27, 3  ;;  %2043 = vmatprep.subr.bf16.mxu0 %v2429_v0  ;;  %s2431_s27 = smov 96  }
  0x3b   : > { %s469_s22 = scalar_lea.vmem %s2879_s0, %s1933_s14  ;;  %s2432_s14 = smov 64  }
  0x3c   : > { %v2622_v3 = vld [vmem:[%s469_s22] sm:$0xff]  ;;  %v2624_v4 = vld [vmem:[%s469_s22 + $0x8] sm:$0xff]  ;;  %s2435_s22 = smov 56   ;;  %s2437_s30 = smov 112  }
  0x3d   : > { %v475_v5 = vpack.c.bf16 %v2624_v4, %v2622_v3  ;;  %2044 = vmatpush3.bf16.msra.mxu0 %v2253_v2  ;;  %s2438_s16 = smov 48   ;;  %s2439_s21 = smov 72  }
  0x3e   : > { %2055 = vmatprep.subr.bf16.mxu0 %v2429_v0  ;;  %s2440_s24 = smov 104   ;;  %s2441_s15 = smov 40  }
  0x40   : > { %2046 = vmatmul.mubr.msk.bf16.vlgmr.msra.gmra.mxu0 %vm499_vm1, %v475_v5 }
  0x41   : > { %2057 = vmatprep.mubr.msk.bf16.mxu0 %vm2430_vm0, %v2429_v0 }
 0x100   : > { %v537_v7 = vpop.f32.mrf.mxu0 }
 0x101   : > { %v538_v8 = vadd.f32 %v1934_v6, %v537_v7 }
 0x102   : > { %v2047_v9 = vpop.f32.mrf.mxu0 }
 0x103   : > { %v2636_v10 = vpack.c.bf16 %v538_v8, %v538_v8 }
 0x104   : > { %v540_v11 = vpop.f32.mrf.mxu0 }
 0x105   : > { %v541_v12 = vadd.f32 %v1934_v6, %v540_v11  ;;  %547 = vrot.lane.b32.xlu0 %v2636_v10, %s2431_s27 }
 0x106   : > { %v2048_v13 = vpop.f32.mrf.mxu0 }
 0x107   : > { %v2639_v14 = vpack.c.bf16 %v541_v12, %v541_v12 }
 0x109   : > { %597 = vrot.lane.b32.xlu0 %v2639_v14, %s2431_s27  ;;  %s2897_s27 = smov 8  }
 0x177   : > { %v548_v15 = vpop.permute.xlu0 %547 }
 0x178   : > { %v554_v16 = vsel %vm549_vm2, %v548_v15, 0 }
 0x179   : > { %2050 = vmatpush3.bf16.xpose.msra.mxu1 %v554_v16 }
 0x17a   : > { %2061 = vmatprep.subr.bf16.mxu1 %v2429_v0 }
 0x17b   : > { %v598_v17 = vpop.permute.xlu0 %597 }
 0x17c   : > { %v603_v18 = vsel %vm549_vm2, %v598_v17, 0 }
 0x17d   : > { %2056 = vmatpush3.bf16.xpose.msra.mxu0 %v603_v18 }
 0x17e   : > { %2067 = vmatprep.subr.bf16.mxu0 %v2429_v0 }
 0x180   : > { %2052 = vmatmul.mubr.msk.bf16.vlgmr.msra.gmra.mxu1 %vm549_vm2, %v2636_v10 }
 0x181   : > { %2063 = vmatprep.mubr.msk.bf16.mxu1 %vm2430_vm0, %v2429_v0 }
 0x184   : > { %2058 = vmatmul.mubr.msk.bf16.vlgmr.msra.gmra.mxu0 %vm549_vm2, %v2639_v14 }
 0x185   : > { %2069 = vmatprep.mubr.msk.bf16.mxu0 %vm2430_vm0, %v2429_v0 }
 0x240   : > { %v590_v19 = vpop.f32.mrf.mxu1 }
 0x241   : > { %v645_v20 = vmul.f32 0.35355338, %v590_v19 }
 0x242   : > { %v2053_v21 = vpop.f32.mrf.mxu1 }
 0x243   : > { %v647_v22 = vsel %vm549_vm2, %v645_v20, -inf }
 0x244   : > { %648 = vmax.xlane.f32.xlu1 %v647_v22  ;;  %v593_v23 = vpop.f32.mrf.mxu1  ;;  %v639_v24 = vpop.f32.mrf.mxu0 }
 0x245   : > { %v646_v25 = vmul.f32 0.35355338, %v639_v24 }
 0x246   : > { %v2054_v26 = vpop.f32.mrf.mxu1  ;;  %v2059_v27 = vpop.f32.mrf.mxu0 }
 0x247   : > { %v650_v28 = vsel %vm549_vm2, %v646_v25, -inf }
 0x248   : > { %651 = vmax.xlane.f32.xlu1 %v650_v28  ;;  %v642_v29 = vpop.f32.mrf.mxu0 }
 0x24a   : > { %v2060_v30 = vpop.f32.mrf.mxu0 }
 0x259   : > { %671 = vrot.lane.b32.xlu1 %v2636_v10, %s2432_s14 }
 0x25d   : > { %720 = vrot.lane.b32.xlu1 %v2639_v14, %s2432_s14  ;;  %s2443_s14 = smov 16  }
 0x261   : > { %781 = vrot.lane.b32.xlu1 %v2636_v10, %s2433_s17 }
 0x2cd   : > { %v649_v31 = vpop.xlane.xlu1 %648 }
 0x2ce   : > { %v653_v32 = vsub.f32 %v645_v20, %v649_v31 }
 0x2d0   : > { %v655_v33 = vmul.f32 1.442695, %v653_v32 }
 0x2d1   : > { %v652_v34 = vpop.xlane.xlu1 %651 }
 0x2d2   : > { %2263 = vpow2.f32 %v655_v33  ;;  %v654_v35 = vsub.f32 %v646_v25, %v652_v34 }
 0x2d4   : > { %v657_v36 = vmul.f32 1.442695, %v654_v35 }
 0x2d5   : > { %v672_v37 = vpop.permute.xlu1 %671 }
 0x2d6   : > { %2265 = vpow2.f32 %v657_v36  ;;  %v678_v38 = vsel %vm676_vm3, %v672_v37, 0 }
 0x2d7   : > { %2062 = vmatpush3.bf16.msra.mxu1 %v678_v38 }
 0x2d8   : > { %2073 = vmatprep.subr.bf16.mxu1 %v2429_v0 }
 0x2d9   : > { %v721_v39 = vpop.permute.xlu1 %720 }
 0x2da   : > { %v726_v40 = vsel %vm676_vm3, %v721_v39, 0 }
 0x2db   : > { %2068 = vmatpush3.bf16.msra.mxu0 %v726_v40 }
 0x2dc   : > { %2079 = vmatprep.subr.bf16.mxu0 %v2429_v0 }
 0x2dd   : > { %v782_v45 = vpop.permute.xlu1 %781 }
 0x2de   : > { %v787_v52 = vsel %vm549_vm2, %v782_v45, 0 }
 0x2df   : > { %v2264_v41 = vpop.eup %2263 }
 0x2e0   : > { %v659_v42 = vsel %vm549_vm2, %v2264_v41, 0.0 }
 0x2e1   : > { %660 = vadd.xlane.f32.xlu0 %v659_v42 }
 0x2e3   : > { %v2266_v43 = vpop.eup %2265 }
 0x2e4   : > { %v662_v44 = vsel %vm549_vm2, %v2266_v43, 0.0 }
 0x2e5   : > { %663 = vadd.xlane.f32.xlu1 %v662_v44 }
 0x2f6   : > { %831 = vrot.lane.b32.xlu1 %v2639_v14, %s2433_s17  ;;  %s2444_s17 = smov 24  }
 0x2f7   : > { %779 = vrot.lane.b32.xlu0 %v2636_v10, %s2434_s20 }
 0x2fa   : > { %829 = vrot.lane.b32.xlu1 %v2639_v14, %s2434_s20 }
 0x36a   : > { %v661_v46 = vpop.xlane.xlu0 %660 }
 0x36b   : > { %2267 = vrcp.f32 %v661_v46 }
 0x36e   : > { %v664_v47 = vpop.xlane.xlu1 %663  ;;  %v780_v57 = vpop.permute.xlu0 %779 }
 0x36f   : > { %2269 = vrcp.f32 %v664_v47 }
 0x372   : > { %v832_v54 = vpop.permute.xlu1 %831 }
 0x373   : > { %v837_v56 = vsel %vm549_vm2, %v832_v54, 0 }
 0x376   : > { %v830_v58 = vpop.permute.xlu1 %829 }
 0x378   : > { %v2268_v48 = vpop.eup %2267 }
 0x379   : > { %v667_v49 = vmul.f32 %v2268_v48, %v2264_v41 }
 0x37b   : > { %v669_v50 = vpack.c.bf16 %v667_v49, %v667_v49 }
 0x37c   : > { %v2270_v51 = vpop.eup %2269 }
 0x37d   : > { %2064 = vmatmul.mubr.msk.bf16.vlgmr.msra.gmra.mxu1 %vm549_vm2, %v669_v50  ;;  %v668_v53 = vmul.f32 %v2270_v51, %v2266_v43 }
 0x37e   : > { %2074 = vmatpush3.bf16.xpose.msra.mxu1 %v787_v52  ;;  %2075 = vmatprep.mubr.msk.bf16.mxu1 %vm2430_vm0, %v2429_v0 }
 0x37f   : > { %v670_v55 = vpack.c.bf16 %v668_v53, %v668_v53  ;;  %2085 = vmatprep.subr.bf16.mxu1 %v2429_v0 }
 0x381   : > { %2070 = vmatmul.mubr.msk.bf16.vlgmr.msra.gmra.mxu0 %vm549_vm2, %v670_v55 }
 0x382   : > { %2080 = vmatpush3.bf16.xpose.msra.mxu0 %v837_v56  ;;  %2081 = vmatprep.mubr.msk.bf16.mxu0 %vm2430_vm0, %v2429_v0 }
 0x383   : > { %2091 = vmatprep.subr.bf16.mxu0 %v2429_v0 }
 0x385   : > { %2076 = vmatmul.mubr.msk.bf16.vlgmr.msra.gmra.mxu1 %vm549_vm2, %v780_v57 }
 0x386   : > { %2087 = vmatprep.mubr.msk.bf16.mxu1 %vm2430_vm0, %v2429_v0 }
 0x389   : > { %2082 = vmatmul.mubr.msk.bf16.vlgmr.msra.gmra.mxu0 %vm549_vm2, %v830_v58 }
 0x38a   : > { %2093 = vmatprep.mubr.msk.bf16.mxu0 %vm2430_vm0, %v2429_v0 }
 0x43d   : > { %v714_v59 = vpop.f32.mrf.mxu1 }
 0x43e   : > { %v1986_v60 = vpack.c.bf16 %v714_v59, %v714_v59 }
 0x43f   : > { %v2065_v61 = vpop.f32.mrf.mxu1 }
 0x440   : > { %777 = vst.msk [vmem:[#allocation2] sm:$0xf] %vm776_vm4, %v1986_v60 }
 0x441   : > { %v717_v62 = vpop.f32.mrf.mxu1  ;;  %v762_v63 = vpop.f32.mrf.mxu0 }
 0x442   : > { %v1987_v1 = vpack.c.bf16 %v762_v63, %v762_v63 }
 0x443   : > { %v2066_v2 = vpop.f32.mrf.mxu1  ;;  %v2071_v5 = vpop.f32.mrf.mxu0 }
 0x444   : > { %778 = vst.msk [vmem:[#allocation2 + $0x4] sm:$0xf] %vm776_vm4, %v1987_v1 }
 0x445   : > { %v765_v6 = vpop.f32.mrf.mxu0  ;;  %v823_v7 = vpop.f32.mrf.mxu1 }
 0x446   : > { %v879_v8 = vmul.f32 0.35355338, %v823_v7 }
 0x447   : > { %v2072_v9 = vpop.f32.mrf.mxu0  ;;  %v2077_v11 = vpop.f32.mrf.mxu1 }
 0x448   : > { %v881_v12 = vsel %vm549_vm2, %v879_v8, -inf }
 0x449   : > { %882 = vmax.xlane.f32.xlu1 %v881_v12  ;;  %v826_v13 = vpop.f32.mrf.mxu1  ;;  %v873_v15 = vpop.f32.mrf.mxu0 }
 0x44a   : > { %v880_v16 = vmul.f32 0.35355338, %v873_v15 }
 0x44b   : > { %v2078_v17 = vpop.f32.mrf.mxu1  ;;  %v2083_v18 = vpop.f32.mrf.mxu0 }
 0x44c   : > { %v884_v19 = vsel %vm549_vm2, %v880_v16, -inf }
 0x44d   : > { %885 = vmax.xlane.f32.xlu0 %v884_v19  ;;  %v876_v20 = vpop.f32.mrf.mxu0 }
 0x44f   : > { %v2084_v21 = vpop.f32.mrf.mxu0 }
 0x45a   : > { %905 = vrot.lane.b32.xlu1 %v2636_v10, %s2435_s22 }
 0x45e   : > { %1018 = vrot.lane.b32.xlu1 %v2636_v10, %s2436_s23 }
 0x463   : > { %953 = vrot.lane.b32.xlu0 %v2639_v14, %s2435_s22 }
 0x467   : > { %1016 = vrot.lane.b32.xlu0 %v2636_v10, %s2437_s30 }
 0x4d2   : > { %v883_v22 = vpop.xlane.xlu1 %882 }
 0x4d3   : > { %v887_v23 = vsub.f32 %v879_v8, %v883_v22 }
 0x4d5   : > { %v889_v24 = vmul.f32 1.442695, %v887_v23 }
 0x4d6   : > { %v906_v25 = vpop.permute.xlu1 %905  ;;  %v886_v26 = vpop.xlane.xlu0 %885 }
 0x4d7   : > { %2271 = vpow2.f32 %v889_v24  ;;  %v911_v27 = vsel %vm676_vm3, %v906_v25, 0  ;;  %v888_v28 = vsub.f32 %v880_v16, %v886_v26 }
 0x4d8   : > { %2086 = vmatpush3.bf16.msra.mxu1 %v911_v27 }
 0x4d9   : > { %v891_v29 = vmul.f32 1.442695, %v888_v28  ;;  %2097 = vmatprep.subr.bf16.mxu1 %v2429_v0 }
 0x4da   : > { %v954_v30 = vpop.permute.xlu0 %953  ;;  %v1019_v36 = vpop.permute.xlu1 %1018 }
 0x4db   : > { %2273 = vpow2.f32 %v891_v29  ;;  %v959_v31 = vsel %vm676_vm3, %v954_v30, 0  ;;  %v1024_v43 = vsel %vm549_vm2, %v1019_v36, 0 }
 0x4dc   : > { %2092 = vmatpush3.bf16.msra.mxu0 %v959_v31 }
 0x4dd   : > { %2103 = vmatprep.subr.bf16.mxu0 %v2429_v0 }
 0x4de   : > { %v1017_v48 = vpop.permute.xlu0 %1016 }
 0x4e4   : > { %v2272_v32 = vpop.eup %2271 }
 0x4e5   : > { %v893_v33 = vsel %vm549_vm2, %v2272_v32, 0.0 }
 0x4e6   : > { %894 = vadd.xlane.f32.xlu1 %v893_v33 }
 0x4e8   : > { %v2274_v34 = vpop.eup %2273 }
 0x4e9   : > { %v896_v35 = vsel %vm549_vm2, %v2274_v34, 0.0 }
 0x4ea   : > { %897 = vadd.xlane.f32.xlu1 %v896_v35 }
 0x4fb   : > { %1068 = vrot.lane.b32.xlu1 %v2639_v14, %s2436_s23 }
 0x4ff   : > { %1066 = vrot.lane.b32.xlu1 %v2639_v14, %s2437_s30 }
 0x56f   : > { %v895_v37 = vpop.xlane.xlu1 %894 }
 0x570   : > { %2275 = vrcp.f32 %v895_v37 }
 0x573   : > { %v898_v38 = vpop.xlane.xlu1 %897 }
 0x574   : > { %2277 = vrcp.f32 %v898_v38 }
 0x577   : > { %v1069_v45 = vpop.permute.xlu1 %1068 }
 0x578   : > { %v1074_v47 = vsel %vm549_vm2, %v1069_v45, 0 }
 0x57b   : > { %v1067_v49 = vpop.permute.xlu1 %1066 }
 0x57d   : > { %v2276_v39 = vpop.eup %2275 }
 0x57e   : > { %v901_v40 = vmul.f32 %v2276_v39, %v2272_v32 }
 0x580   : > { %v903_v41 = vpack.c.bf16 %v901_v40, %v901_v40 }
 0x581   : > { %v2278_v42 = vpop.eup %2277 }
 0x582   : > { %2088 = vmatmul.mubr.msk.bf16.vlgmr.msra.gmra.mxu1 %vm549_vm2, %v903_v41  ;;  %v902_v44 = vmul.f32 %v2278_v42, %v2274_v34 }
 0x583   : > { %2098 = vmatpush3.bf16.xpose.msra.mxu1 %v1024_v43  ;;  %2099 = vmatprep.mubr.msk.bf16.mxu1 %vm2430_vm0, %v2429_v0 }
 0x584   : > { %v904_v46 = vpack.c.bf16 %v902_v44, %v902_v44  ;;  %2109 = vmatprep.subr.bf16.mxu1 %v2429_v0 }
 0x586   : > { %2094 = vmatmul.mubr.msk.bf16.vlgmr.msra.gmra.mxu0 %vm549_vm2, %v904_v46 }
 0x587   : > { %2104 = vmatpush3.bf16.xpose.msra.mxu0 %v1074_v47  ;;  %2105 = vmatprep.mubr.msk.bf16.mxu0 %vm2430_vm0, %v2429_v0 }
 0x588   : > { %2115 = vmatprep.subr.bf16.mxu0 %v2429_v0 }
 0x58a   : > { %2100 = vmatmul.mubr.msk.bf16.vlgmr.msra.gmra.mxu1 %vm549_vm2, %v1017_v48 }
 0x58b   : > { %2111 = vmatprep.mubr.msk.bf16.mxu1 %vm2430_vm0, %v2429_v0 }
 0x58e   : > { %2106 = vmatmul.mubr.msk.bf16.vlgmr.msra.gmra.mxu0 %vm549_vm2, %v1067_v49 }
 0x58f   : > { %2117 = vmatprep.mubr.msk.bf16.mxu0 %vm2430_vm0, %v2429_v0 }
 0x642   : > { %v2714_v50 = vpop.f32.mrf.mxu1 }
 0x644   : > { %v2089_v51 = vpop.f32.mrf.mxu1 }
 0x646   : > { %v950_v52 = vpop.f32.mrf.mxu1  ;;  %v2716_v53 = vpop.f32.mrf.mxu0 }
 0x648   : > { %v2090_v54 = vpop.f32.mrf.mxu1  ;;  %v2095_v55 = vpop.f32.mrf.mxu0 }
 0x64a   : > { %v998_v56 = vpop.f32.mrf.mxu0  ;;  %v1060_v57 = vpop.f32.mrf.mxu1 }
 0x64b   : > { %v1116_v58 = vmul.f32 0.35355338, %v1060_v57 }
 0x64c   : > { %v2096_v59 = vpop.f32.mrf.mxu0  ;;  %v2101_v60 = vpop.f32.mrf.mxu1 }
 0x64d   : > { %v1118_v61 = vsel %vm549_vm2, %v1116_v58, -inf }
 0x64e   : > { %1119 = vmax.xlane.f32.xlu0 %v1118_v61  ;;  %v1063_v62 = vpop.f32.mrf.mxu1  ;;  %v1110_v63 = vpop.f32.mrf.mxu0  ;;  %v1988_v61 = vpack.c.bf16 %v2714_v50, %v2714_v50 }
 0x64f   : > { %v1117_v1 = vmul.f32 0.35355338, %v1110_v63  ;;  %v1989_v62 = vpack.c.bf16 %v2716_v53, %v2716_v53 }
 0x650   : > { %v2102_v2 = vpop.f32.mrf.mxu1  ;;  %v2107_v5 = vpop.f32.mrf.mxu0 }
 0x651   : > { %v1121_v6 = vsel %vm549_vm2, %v1117_v1, -inf }
 0x652   : > { %1122 = vmax.xlane.f32.xlu1 %v1121_v6  ;;  %v1113_v7 = vpop.f32.mrf.mxu0 }
 0x654   : > { %v2108_v8 = vpop.f32.mrf.mxu0 }
 0x663   : > { %1142 = vrot.lane.b32.xlu1 %v2636_v10, %s2438_s16 }
 0x667   : > { %1255 = vrot.lane.b32.xlu1 %v2636_v10, %s2439_s21 }
 0x66b   : > { %1305 = vrot.lane.b32.xlu1 %v2639_v14, %s2439_s21 }
 0x66f   : > { %1303 = vrot.lane.b32.xlu1 %v2639_v14, %s2440_s24 }
 0x6d7   : > { %v1120_v9 = vpop.xlane.xlu0 %1119 }
 0x6d8   : > { %v1124_v11 = vsub.f32 %v1116_v58, %v1120_v9 }
 0x6da   : > { %v1126_v12 = vmul.f32 1.442695, %v1124_v11 }
 0x6db   : > { %v1123_v13 = vpop.xlane.xlu1 %1122 }
 0x6dc   : > { %2279 = vpow2.f32 %v1126_v12  ;;  %v1125_v15 = vsub.f32 %v1117_v1, %v1123_v13 }
 0x6de   : > { %v1128_v16 = vmul.f32 1.442695, %v1125_v15 }
 0x6df   : > { %v1143_v17 = vpop.permute.xlu1 %1142 }
 0x6e0   : > { %2281 = vpow2.f32 %v1128_v16  ;;  %v1148_v18 = vsel %vm676_vm3, %v1143_v17, 0 }
 0x6e1   : > { %2110 = vmatpush3.bf16.msra.mxu1 %v1148_v18 }
 0x6e2   : > { %2121 = vmatprep.subr.bf16.mxu1 %v2429_v0 }
 0x6e3   : > { %v1256_v28 = vpop.permute.xlu1 %1255 }
 0x6e4   : > { %v1261_v32 = vsel %vm549_vm2, %v1256_v28, 0  ;;  %v2254_v28 = vld [vmem:[#allocation3 + $0x8] sm:$0xff]  }
 0x6e7   : > { %v1306_v34 = vpop.permute.xlu1 %1305 }
 0x6e8   : > { %v1311_v36 = vsel %vm549_vm2, %v1306_v34, 0 }
 0x6e9   : > { %v2280_v19 = vpop.eup %2279 }
 0x6ea   : > { %v1130_v20 = vsel %vm549_vm2, %v2280_v19, 0.0 }
 0x6eb   : > { %1131 = vadd.xlane.f32.xlu0 %v1130_v20  ;;  %v1304_v38 = vpop.permute.xlu1 %1303 }
 0x6ed   : > { %v2282_v21 = vpop.eup %2281 }
 0x6ee   : > { %v1133_v22 = vsel %vm549_vm2, %v2282_v21, 0.0 }
 0x6ef   : > { %1134 = vadd.xlane.f32.xlu0 %v1133_v22 }
 0x705   : > { %1190 = vrot.lane.b32.xlu0 %v2639_v14, %s2438_s16  ;;  %s1994_s16 = sshll.u32 %s2538_s29, 8 }
 0x706   : > { %s2833_s20 = scalar_lea.hbm %s2892_s13, %s1994_s16 }
 0x709   : > { %1253 = vrot.lane.b32.xlu0 %v2636_v10, %s2440_s24 }
 0x774   : > { %v1132_v23 = vpop.xlane.xlu0 %1131 }
 0x775   : > { %2283 = vrcp.f32 %v1132_v23 }
 0x778   : > { %v1135_v24 = vpop.xlane.xlu0 %1134 }
 0x779   : > { %2285 = vrcp.f32 %v1135_v24 }
 0x77c   : > { %v1191_v25 = vpop.permute.xlu0 %1190 }
 0x77d   : > { %v1196_v26 = vsel %vm676_vm3, %v1191_v25, 0 }
 0x77e   : > { %2116 = vmatpush3.bf16.msra.mxu0 %v1196_v26 }
 0x77f   : > { %2127 = vmatprep.subr.bf16.mxu0 %v2429_v0 }
 0x780   : > { %v1254_v37 = vpop.permute.xlu0 %1253 }
 0x782   : > { %v2284_v27 = vpop.eup %2283 }
 0x783   : > { %v1138_v29 = vmul.f32 %v2284_v27, %v2280_v19 }
 0x785   : > { %v1140_v30 = vpack.c.bf16 %v1138_v29, %v1138_v29  ;;  %v2255_v29 = vld [vmem:[#allocation3] sm:$0xff]  }
 0x786   : > { %v2286_v31 = vpop.eup %2285 }
 0x787   : > { %2112 = vmatmul.mubr.msk.bf16.vlgmr.msra.gmra.mxu1 %vm549_vm2, %v1140_v30  ;;  %v1139_v33 = vmul.f32 %v2286_v31, %v2282_v21 }
 0x788   : > { %2122 = vmatpush3.bf16.xpose.msra.mxu1 %v1261_v32  ;;  %2123 = vmatprep.mubr.msk.bf16.mxu1 %vm2430_vm0, %v2429_v0 }
 0x789   : > { %v1141_v35 = vpack.c.bf16 %v1139_v33, %v1139_v33  ;;  %2133 = vmatprep.subr.bf16.mxu1 %v2429_v0 }
 0x78b   : > { %2118 = vmatmul.mubr.msk.bf16.vlgmr.msra.gmra.mxu0 %vm549_vm2, %v1141_v35 }
 0x78c   : > { %2128 = vmatpush3.bf16.xpose.msra.mxu0 %v1311_v36  ;;  %2129 = vmatprep.mubr.msk.bf16.mxu0 %vm2430_vm0, %v2429_v0 }
 0x78d   : > { %2139 = vmatprep.subr.bf16.mxu0 %v2429_v0 }
 0x78f   : > { %2124 = vmatmul.mubr.msk.bf16.vlgmr.msra.gmra.mxu1 %vm549_vm2, %v1254_v37 }
 0x790   : > { %2135 = vmatprep.mubr.msk.bf16.mxu1 %vm2430_vm0, %v2429_v0 }
 0x793   : > { %2130 = vmatmul.mubr.msk.bf16.vlgmr.msra.gmra.mxu0 %vm549_vm2, %v1304_v38 }
 0x794   : > { %2141 = vmatprep.mubr.msk.bf16.mxu0 %vm2430_vm0, %v2429_v0 }
 0x847   : > { %v1184_v39 = vpop.f32.mrf.mxu1 }
 0x848   : > { %v1990_v17 = vpack.c.bf16 %v1184_v39, %v1184_v39 }
 0x849   : > { %v2113_v40 = vpop.f32.mrf.mxu1 }
 0x84b   : > { %v1187_v41 = vpop.f32.mrf.mxu1  ;;  %v1232_v42 = vpop.f32.mrf.mxu0 }
 0x84c   : > { %v1991_v63 = vpack.c.bf16 %v1232_v42, %v1232_v42 }
 0x84d   : > { %v2114_v43 = vpop.f32.mrf.mxu1  ;;  %v2119_v44 = vpop.f32.mrf.mxu0 }
 0x84e   : > { %v1962_v43 = vld [vmem:[%s2883_s4] ss:$0 sm:$0xff] }
 0x84f   : > { %v1235_v45 = vpop.f32.mrf.mxu0  ;;  %v1297_v46 = vpop.f32.mrf.mxu1 }
 0x850   : > { %v1353_v47 = vmul.f32 0.35355338, %v1297_v46 }
 0x851   : > { %v2120_v48 = vpop.f32.mrf.mxu0  ;;  %v2125_v49 = vpop.f32.mrf.mxu1 }
 0x852   : > { %v1355_v51 = vsel %vm549_vm2, %v1353_v47, -inf }
 0x853   : > { %1356 = vmax.xlane.f32.xlu0 %v1355_v51  ;;  %v1300_v52 = vpop.f32.mrf.mxu1  ;;  %v1347_v54 = vpop.f32.mrf.mxu0 }
 0x854   : > { %v1354_v55 = vmul.f32 0.35355338, %v1347_v54 }
 0x855   : > { %v2126_v56 = vpop.f32.mrf.mxu1  ;;  %v2131_v57 = vpop.f32.mrf.mxu0 }
 0x856   : > { %v1358_v58 = vsel %vm549_vm2, %v1354_v55, -inf }
 0x857   : > { %1359 = vmax.xlane.f32.xlu1 %v1358_v58  ;;  %v1350_v59 = vpop.f32.mrf.mxu0 }
 0x859   : > { %v2132_v60 = vpop.f32.mrf.mxu0 }
 0x85a   : > { %v2258_v60 = vld [vmem:[#allocation6] sm:$0xff]  }
 0x868   : > { %1379 = vrot.lane.b32.xlu1 %v2636_v10, %s2441_s15 }
 0x86c   : > { %1007 = vrot.lane.b32.xlu1 %v1988_v61, %s2897_s27 }
 0x870   : > { %1009 = vrot.lane.b32.xlu1 %v1989_v62, %s2897_s27 }
 0x874   : > { %1246 = vrot.lane.b32.xlu1 %v1991_v63, %s2443_s14 }
 0x8dc   : > { %v1357_v1 = vpop.xlane.xlu0 %1356 }
 0x8dd   : > { %v1361_v2 = vsub.f32 %v1353_v47, %v1357_v1 }
 0x8df   : > { %v1363_v5 = vmul.f32 1.442695, %v1361_v2 }
 0x8e0   : > { %v1360_v6 = vpop.xlane.xlu1 %1359 }
 0x8e1   : > { %2287 = vpow2.f32 %v1363_v5  ;;  %v1362_v10 = vsub.f32 %v1354_v55, %v1360_v6 }
 0x8e3   : > { %v1365_v7 = vmul.f32 1.442695, %v1362_v10 }
 0x8e4   : > { %v1380_v8 = vpop.permute.xlu1 %1379 }
 0x8e5   : > { %2289 = vpow2.f32 %v1365_v7  ;;  %v1385_v50 = vsel %vm676_vm3, %v1380_v8, 0 }
 0x8e6   : > { %2134 = vmatpush3.bf16.msra.mxu1 %v1385_v50 }
 0x8e7   : > { %2145 = vmatprep.subr.bf16.mxu1 %v2429_v0 }
 0x8e8   : > { %v1008_v53 = vpop.permute.xlu1 %1007 }
 0x8e9   : > { %1014 = vst.msk [vmem:[#allocation2] sm:$0xf] %vm1013_vm5, %v1008_v53 }
 0x8ec   : > { %v1010_v9 = vpop.permute.xlu1 %1009 }
 0x8ed   : > { %1015 = vst.msk [vmem:[#allocation2 + $0x4] sm:$0xf] %vm1013_vm5, %v1010_v9 }
 0x8ee   : > { %v2288_v11 = vpop.eup %2287 }
 0x8ef   : > { %v1367_v12 = vsel %vm549_vm2, %v2288_v11, 0.0 }
 0x8f0   : > { %1368 = vadd.xlane.f32.xlu0 %v1367_v12  ;;  %v1247_v13 = vpop.permute.xlu1 %1246 }
 0x8f1   : > { %1252 = vst.msk [vmem:[#allocation2 + $0x4] sm:$0xf] %vm1250_vm6, %v1247_v13 }
 0x8f2   : > { %v2290_v15 = vpop.eup %2289 }
 0x8f3   : > { %v1370_v16 = vsel %vm549_vm2, %v2290_v15, 0.0 }
 0x8f4   : > { %1371 = vadd.xlane.f32.xlu0 %v1370_v16 }
 0x90a   : > { %1427 = vrot.lane.b32.xlu0 %v2639_v14, %s2441_s15 }
 0x90e   : > { %1244 = vrot.lane.b32.xlu0 %v1990_v17, %s2443_s14  ;;  %s462_s14 = sand.u32 1, %s2415_s26  }
 0x90f   : > { %s1931_s22 = sshll.u32 %s462_s14, 4  ;;  %s2838_s23 = scalar_lea.sflag [#allocation5], %s462_s14 }
 0x910   : > { %s464_s21 = scalar_lea.vmem [#allocation8], %s1931_s22  ;;  %s2445_s22 = smov [#allocation8]  }
 0x911   : > { %s1839_s24 = sshll.u32 %s464_s21, 4  ;;  %s2359_s30 = sshll.u32 %s2445_s22, 4  ;;  %s2835_s24 = int_to_ptr.vmem [resolvable:$true] %s1839_s24  ;;  %s2360_s30 = int_to_ptr.vmem [resolvable:$false] %s2359_s30 }
 0x912   : > { %s2355_s29 = scalar_lea.vmem %s2835_s24, 256  ;;  %s2361_s16 = scalar_lea.vmem %s2360_s30, 512 }
 0x913   : > { %p2356_p10 = scmp.ne.s32.totalorder %s2835_s24, %s2355_s29  ;;  %p2362_p11 = scmp.lt.s32.totalorder %s2835_s24, %s2360_s30 }
 0x914   : > { %p2363_p0 = scmp.lt.s32.totalorder %s2361_s16, %s2355_s29 }
 0x915   : > { %p2357_p12 = pnand %p2356_p10, %p2555_p5 }
 0x916   : > { %p2364_p1 = por %p2363_p0, %p2362_p11 }
 0x917   : > { %p2358_p8 = pneg %p2357_p12 }
 0x919   : > { %p2365_p3 = pnand %p2364_p1, %p2358_p8 }
 0x979   : > { %v1369_v18 = vpop.xlane.xlu0 %1368 }
 0x97a   : > { %2291 = vrcp.f32 %v1369_v18  ;;  %v1967_v18 = vld [vmem:[%s2888_s9] ss:$0 sm:$0xff] }
 0x97d   : > { %v1372_v19 = vpop.xlane.xlu0 %1371 }
 0x97e   : > { %2293 = vrcp.f32 %v1372_v19 }
 0x981   : > { %v1428_v20 = vpop.permute.xlu0 %1427 }
 0x982   : > { %v1433_v21 = vsel %vm676_vm3, %v1428_v20, 0 }
 0x983   : > { %2140 = vmatpush3.bf16.msra.mxu0 %v1433_v21 }
 0x984   : > { %2153 = vmatprep.subr.bf16.mxu0 %v2429_v0 }
 0x985   : > { %v1245_v22 = vpop.permute.xlu0 %1244 }
 0x986   : > { %1251 = vst.msk [vmem:[#allocation2] sm:$0xf] %vm1250_vm6, %v1245_v22 }
 0x987   : > { %v2292_v23 = vpop.eup %2291 }
 0x988   : > { %v1375_v24 = vmul.f32 %v2292_v23, %v2288_v11  ;;  %v1968_v23 = vld [vmem:[%s2889_s10] ss:$0 sm:$0xff] }
 0x98a   : > { %v1377_v25 = vpack.c.bf16 %v1375_v24, %v1375_v24 }
 0x98b   : > { %v2294_v26 = vpop.eup %2293 }
 0x98c   : > { %2136 = vmatmul.mubr.msk.bf16.vlgmr.msra.gmra.mxu1 %vm549_vm2, %v1377_v25  ;;  %v1376_v14 = vmul.f32 %v2294_v26, %v2290_v15 }
 0x98d   : > { %2149 = vmatprep.mubr.msk.bf16.mxu1 %vm2430_vm0, %v2429_v0  ;;  %2146 = vmatpush3.bf16.msra.mxu1 %v2254_v28  ;;  %v2261_v28 = vld [vmem:[%s2886_s7 + $0x8] sm:$0xff]  }
 0x98e   : > { %v1378_v27 = vpack.c.bf16 %v1376_v14, %v1376_v14  ;;  %2147 = vmatprep.subr.bf16.mxu1 %v2429_v0 }
 0x990   : > { %2142 = vmatmul.mubr.msk.bf16.vlgmr.msra.gmra.mxu0 %vm549_vm2, %v1378_v27  ;;  %v2260_v27 = vld [vmem:[%s2886_s7 + $0x10] sm:$0xff]  }
 0x991   : > { %2157 = vmatprep.mubr.msk.bf16.mxu0 %vm2430_vm0, %v2429_v0  ;;  %2148 = vmatpush3.bf16.msra.mxu1 %v2255_v29  ;;  %v2262_v29 = vld [vmem:[%s2886_s7] sm:$0xff]  }
 0x992   : > { %2161 = vmatprep.subr.bf16.mxu1 %v2429_v0 }
 0xa4c   : > { %v1421_v30 = vpop.f32.mrf.mxu1 }
 0xa4d   : > { %v1992_v31 = vpack.c.bf16 %v1421_v30, %v1421_v30  ;;  %v1969_v30 = vld [vmem:[%s2885_s6] ss:$0 sm:$0xff] }
 0xa4e   : > { %v2137_v32 = vpop.f32.mrf.mxu1 }
 0xa4f   : > { %1481 = vrot.lane.b32.xlu0 %v1992_v31, %s2444_s17 }
 0xa50   : > { %v1424_v33 = vpop.f32.mrf.mxu1  ;;  %v1469_v34 = vpop.f32.mrf.mxu0 }
 0xa51   : > { %v1993_v35 = vpack.c.bf16 %v1469_v34, %v1469_v34 }
 0xa52   : > { %v2138_v36 = vpop.f32.mrf.mxu1  ;;  %v2143_v37 = vpop.f32.mrf.mxu0 }
 0xa53   : > { %1483 = vrot.lane.b32.xlu1 %v1993_v35, %s2444_s17 }
 0xa54   : > { %v1472_v38 = vpop.f32.mrf.mxu0 }
 0xa56   : > { %v2144_v39 = vpop.f32.mrf.mxu0 }
 0xac1   : > { %v1482_v40 = vpop.permute.xlu0 %1481 }
 0xac2   : > { %1488 = vst.msk [vmem:[#allocation2] sm:$0xf] %vm1487_vm7, %v1482_v40 }
 0xac5   : > { %v1484_v41 = vpop.permute.xlu1 %1483 }
 0xac6   : > { %1489 = vst.msk [vmem:[#allocation2 + $0x4] sm:$0xf] %vm1487_vm7, %v1484_v41 }
 0xacd   : > { %v2256_v42 = vld [vmem:[#allocation2] sm:$0xff]  }
 0xace   : > { %2150 = vmatmul.mubr.msk.bf16.vlgmr.msra.gmra.mxu1 %vm499_vm1, %v2256_v42 }
 0xacf   : > { %2169 = vmatprep.mubr.msk.bf16.mxu1 %vm2430_vm0, %v2429_v0 }
 0xb8e   : > { %v1557_v44 = vpop.f32.mrf.mxu1 }
 0xb8f   : > { %v1558_v45 = vadd.f32 %v1962_v43, %v1557_v44 }
 0xb90   : > { %v2151_v46 = vpop.f32.mrf.mxu1 }
 0xb91   : > { %v1564_v47 = vadd.f32 %v1558_v45, %v2622_v3  ;;  %v2257_v3 = vld [vmem:[#allocation6 + $0x8] sm:$0xff]  }
 0xb92   : > { %v1560_v48 = vpop.f32.mrf.mxu1  ;;  %2154 = vmatpush3.bf16.msra.mxu0 %v2257_v3 }
 0xb93   : > { %v1561_v49 = vadd.f32 %v1962_v43, %v1560_v48  ;;  %v1568_v51 = vsel %vm499_vm1, %v1564_v47, 0.0  ;;  %v1574_v52 = vmul.f32 %v1564_v47, %v1564_v47  ;;  %2155 = vmatprep.subr.bf16.mxu0 %v2429_v0 }
 0xb94   : > { %1569 = vadd.xlane.f32.xlu0 %v1568_v51  ;;  %v2152_v54 = vpop.f32.mrf.mxu1 }
 0xb95   : > { %v1565_v55 = vadd.f32 %v1561_v49, %v2624_v4  ;;  %v1576_v56 = vsel %vm499_vm1, %v1574_v52, 0.0  ;;  %v2259_v4 = vld [vmem:[%s2886_s7 + $0x18] sm:$0xff]  }
 0xb96   : > { %2156 = vmatpush3.bf16.msra.mxu0 %v2258_v60  ;;  %2162 = vmatpush3.bf16.msra.mxu1 %v2259_v4 }
 0xb97   : > { %v1571_v57 = vsel %vm499_vm1, %v1565_v55, 0.0  ;;  %v1575_v58 = vmul.f32 %v1565_v55, %v1565_v55  ;;  %2163 = vmatprep.subr.bf16.mxu1 %v2429_v0 }
 0xb98   : > { %1577 = vadd.xlane.f32.xlu0 %v1576_v56  ;;  %1572 = vadd.xlane.f32.xlu1 %v1571_v57 }
 0xb99   : > { %v1579_v59 = vsel %vm499_vm1, %v1575_v58, 0.0 }
 0xb9a   : > { %2164 = vmatpush3.bf16.msra.mxu1 %v2260_v27 }
 0xb9b   : > { %2165 = vmatprep.subr.bf16.mxu1 %v2429_v0 }
 0xb9c   : > { %1580 = vadd.xlane.f32.xlu0 %v1579_v59 }
 0xb9e   : > { %2166 = vmatpush3.bf16.msra.mxu1 %v2261_v28 }
 0xb9f   : > { %2167 = vmatprep.subr.bf16.mxu1 %v2429_v0  ;;  %v1973_v0 = vld [vmem:[%s2887_s8] ss:$0 sm:$0xff] }
 0xba2   : > { %2168 = vmatpush3.bf16.msra.mxu1 %v2262_v29 }
 0xc1d   : > { %v1570_v61 = vpop.xlane.xlu0 %1569 }
 0xc1e   : > { %v1582_v62 = vmul.f32 0.03125, %v1570_v61 }
 0xc20   : > { %v1586_v2 = vmul.f32 %v1582_v62, %v1582_v62  ;;  %v1592_v15 = vsub.f32 %v1564_v47, %v1582_v62 }
 0xc21   : > { %v1578_v63 = vpop.xlane.xlu0 %1577  ;;  %v1573_v1 = vpop.xlane.xlu1 %1572 }
 0xc22   : > { %v1584_v5 = vmul.f32 0.03125, %v1578_v63  ;;  %v1583_v6 = vmul.f32 0.03125, %v1573_v1 }
 0xc24   : > { %v1588_v10 = vsub.f32 %v1584_v5, %v1586_v2  ;;  %v1587_v50 = vmul.f32 %v1583_v6, %v1583_v6  ;;  %v1593_v19 = vsub.f32 %v1565_v55, %v1583_v6 }
 0xc25   : > { %v1581_v7 = vpop.xlane.xlu0 %1580 }
 0xc26   : > { %v1590_v8 = vmax.f32 %v1588_v10, 0.0  ;;  %v1585_v53 = vmul.f32 0.03125, %v1581_v7 }
 0xc28   : > { %v1594_v9 = vadd.f32 1e-05, %v1590_v8  ;;  %v1589_v11 = vsub.f32 %v1585_v53, %v1587_v50  ;;  %v1979_v53 = vld [vmem:[%s2890_s11] ss:$0 sm:$0xff] }
 0xc2a   : > { %2295 = vrsqrt.f32 %v1594_v9  ;;  %v1591_v12 = vmax.f32 %v1589_v11, 0.0  ;;  %v1980_v11 = vld [vmem:[%s2891_s12] ss:$0 sm:$0xff] }
 0xc2c   : > { %v1595_v13 = vadd.f32 1e-05, %v1591_v12 }
 0xc2e   : > { %2297 = vrsqrt.f32 %v1595_v13 }
 0xc37   : > { %v2296_v16 = vpop.eup %2295 }
 0xc38   : > { %v1598_v17 = vmul.f32 %v2296_v16, %v1592_v15 }
 0xc3a   : > { %v1606_v22 = vmul.f32 %v1967_v18, %v1598_v17 }
 0xc3b   : > { %v2298_v20 = vpop.eup %2297 }
 0xc3c   : > { %v1599_v21 = vmul.f32 %v2298_v20, %v1593_v19  ;;  %v1614_v25 = vadd.f32 %v1968_v23, %v1606_v22 }
 0xc3e   : > { %v1607_v24 = vmul.f32 %v1967_v18, %v1599_v21 }
 0xc40   : > { %v1615_v26 = vadd.f32 %v1968_v23, %v1607_v24 }
 0xc42   : > { %v1616_v14 = vpack.c.bf16 %v1615_v26, %v1614_v25 }
 0xc44   : > { %2158 = vmatmul.mubr.msk.bf16.vlgmr.msra.gmra.mxu0 %vm499_vm1, %v1616_v14 }
 0xd04   : > { %v1677_v31 = vpop.f32.mrf.mxu0 }
 0xd05   : > { %v1678_v33 = vadd.f32 %v1969_v30, %v1677_v31 }
 0xd06   : > { %v2159_v32 = vpop.f32.mrf.mxu0 }
 0xd07   : > { %v1684_v37 = vmax.f32 %v1678_v33, 0.0 }
 0xd08   : > { %v1680_v34 = vpop.f32.mrf.mxu0 }
 0xd09   : > { %v1681_v35 = vadd.f32 %v1969_v30, %v1680_v34 }
 0xd0a   : > { %v2160_v36 = vpop.f32.mrf.mxu0 }
 0xd0b   : > { %v1685_v38 = vmax.f32 %v1681_v35, 0.0 }
 0xd0d   : > { %v1686_v39 = vpack.c.bf16 %v1685_v38, %v1684_v37 }
 0xd0f   : > { %2170 = vmatmul.mubr.msk.bf16.vlgmr.msra.gmra.mxu1 %vm1726_vm8, %v1686_v39 }
 0xdcf   : > { %v1764_v40 = vpop.f32.mrf.mxu1 }
 0xdd0   : > { %v1765_v41 = vadd.f32 %v1973_v0, %v1764_v40 }
 0xdd1   : > { %v2171_v42 = vpop.f32.mrf.mxu1 }
 0xdd2   : > { %v1771_v43 = vadd.f32 %v1765_v41, %v1614_v25 }
 0xdd3   : > { %v1767_v44 = vpop.f32.mrf.mxu1 }
 0xdd4   : > { %v1768_v45 = vadd.f32 %v1973_v0, %v1767_v44  ;;  %v1775_v46 = vsel %vm499_vm1, %v1771_v43, 0.0  ;;  %v1781_v47 = vmul.f32 %v1771_v43, %v1771_v43 }
 0xdd5   : > { %1776 = vadd.xlane.f32.xlu1 %v1775_v46  ;;  %v2172_v48 = vpop.f32.mrf.mxu1 }
 0xdd6   : > { %v1772_v49 = vadd.f32 %v1768_v45, %v1615_v26  ;;  %v1783_v51 = vsel %vm499_vm1, %v1781_v47, 0.0 }
 0xdd8   : > { %v1778_v52 = vsel %vm499_vm1, %v1772_v49, 0.0  ;;  %v1782_v54 = vmul.f32 %v1772_v49, %v1772_v49 }
 0xdd9   : > { %1784 = vadd.xlane.f32.xlu1 %v1783_v51  ;;  %1779 = vadd.xlane.f32.xlu0 %v1778_v52 }
 0xdda   : > { %v1786_v55 = vsel %vm499_vm1, %v1782_v54, 0.0 }
 0xddd   : > { %1787 = vadd.xlane.f32.xlu0 %v1786_v55 }
 0xe5e   : > { %v1777_v56 = vpop.xlane.xlu1 %1776 }
 0xe5f   : > { %v1789_v57 = vmul.f32 0.03125, %v1777_v56 }
 0xe61   : > { %v1793_v3 = vmul.f32 %v1789_v57, %v1789_v57  ;;  %v1799_v8 = vsub.f32 %v1771_v43, %v1789_v57 }
 0xe62   : > { %v1785_v58 = vpop.xlane.xlu1 %1784  ;;  %v1780_v59 = vpop.xlane.xlu0 %1779 }
 0xe63   : > { %v1791_v60 = vmul.f32 0.03125, %v1785_v58  ;;  %v1790_v4 = vmul.f32 0.03125, %v1780_v59 }
 0xe65   : > { %v1795_v61 = vsub.f32 %v1791_v60, %v1793_v3  ;;  %v1794_v1 = vmul.f32 %v1790_v4, %v1790_v4  ;;  %v1800_v13 = vsub.f32 %v1772_v49, %v1790_v4 }
 0xe66   : > { %v1788_v62 = vpop.xlane.xlu0 %1787 }
 0xe67   : > { %v1797_v63 = vmax.f32 %v1795_v61, 0.0  ;;  %v1792_v2 = vmul.f32 0.03125, %v1788_v62 }
 0xe69   : > { %v1801_v5 = vadd.f32 1e-05, %v1797_v63  ;;  %v1796_v6 = vsub.f32 %v1792_v2, %v1794_v1 }
 0xe6b   : > { %2299 = vrsqrt.f32 %v1801_v5  ;;  %v1798_v10 = vmax.f32 %v1796_v6, 0.0 }
 0xe6d   : > { %v1802_v7 = vadd.f32 1e-05, %v1798_v10 }
 0xe6f   : > { %2301 = vrsqrt.f32 %v1802_v7 }
 0xe78   : > { %v2300_v50 = vpop.eup %2299 }
 0xe79   : > { %v1805_v9 = vmul.f32 %v2300_v50, %v1799_v8 }
 0xe7b   : > { %v1813_v12 = vmul.f32 %v1979_v53, %v1805_v9 }
 0xe7c   : > { %v2302_v15 = vpop.eup %2301 }
 0xe7d   : > { %v1821_v16 = vadd.f32 %v1980_v11, %v1813_v12  ;;  %v1806_v17 = vmul.f32 %v2302_v15, %v1800_v13 }
 0xe7f   : > { %v1814_v18 = vmul.f32 %v1979_v53, %v1806_v17  ;;  %1823 = vst.msk [vmem:[%s464_s21] sm:$0xff] %vm499_vm1, %v1821_v16 }
 0xe81   : > { %v1822_v19 = vadd.f32 %v1980_v11, %v1814_v18 }
 0xe83   : > { %1824 = vst.msk [vmem:[%s464_s21 + $0x8] sm:$0xff] %vm499_vm1, %v1822_v19 }
 0xe84   : > { %2368 = shalt.err (!%p2365_p3)
}
 0xe85   : > { %s2369_s14 = scalar_lea.hbm %s2833_s20, 256  ;;  %s2373_s17 = scalar_lea.hbm %s2892_s13, 512 }
 0xe86   : > { %p2370_p2 = scmp.ne.s32.totalorder %s2833_s20, %s2369_s14  ;;  %p2374_p7 = scmp.lt.s32.totalorder %s2833_s20, %s2892_s13 }
 0xe87   : > { %p2375_p6 = scmp.lt.s32.totalorder %s2373_s17, %s2369_s14 }
 0xe88   : > { %p2371_p4 = pnand %p2370_p2, %p2555_p5 }
 0xe89   : > { %p2376_p9 = por %p2375_p6, %p2374_p7 }
 0xe8a   : > { %p2372_p13 = pneg %p2371_p4 }
 0xe8c   : > { %p2377_p10 = pnand %p2376_p9, %p2372_p13 }
 0xe8e   : > { %2380 = shalt.err (!%p2377_p10)
}
 0xe8f   : > { %s2446_s29 = smov 128   ;;  %s2909_s30 = smov 8  }
 0xe90   : > { %2181 = dma.vmem_to_hbm [thread:$0]  (%p2555_p5), %s2835_s24, 256, %s2833_s20, %s2838_s23, %s2446_s29, %s2446_s29, %s2909_s30  }
 0xe91 PF: > { %p2198_p12 = scmp.ge.s32.totalorder %s2423_s28, 2  ;;  %s1854_s16 = sand.u32 1, %s2411_s25  }
 0xe92   : > { %p2910_p8 = scmp.ne.s32.totalorder %s2902_s19, 0  ;;  %s1855_s27 = scalar_lea.sflag [#allocation5], %s1854_s16 }
 0xe94   : > { %p2191_p11 = pnand %p2198_p12, %p2910_p8 }
 0xe96   : > { %p2192_p0 = pneg %p2191_p11 }
 0xe98   : > { %2406 = dma.done.wait (%p2192_p0), %s1855_s27, 256  }
 0xe99   : > { %2408 = vsyncadd (%p2192_p0), %s1855_s27, 4294967040  ;;  %s2911_s28 = sld [smem:[#allocation13_spill]]  ;;  %s2914_s25 = smov %s2415_s26 }
 0xe9a   : > { %s2912_s18 = sld [smem:[#allocation12_spill]] }
 0xe9b   : > { %s2913_s27 = sld [smem:[#allocation14_spill]] }
 0xe9f   : > { %p25_p1 = scmp.ge.s32.totalorder %s2911_s28, 4  }
 0xea0   : > { %s2915_s26 = smov %s2912_s18 }
 0xea1   :  { %27 = sbr.rel (!%p25_p1) target bundleno = 5 (0x5), region = 116 }
 0xea6   :  { %1860 = vsyncpa [#allocation4], 1 }
 0xea7   :  { %1862 = vsyncpa [#allocation4 + $0x1], 1 }
 0xea8   :  { %1863 = vsyncpa [#allocation7], 1 }
 0xea9   :  { %1864 = vsyncpa [#allocation5], 1 }
 0xeaa   :  { %1866 = vsyncpa [#allocation5 + $0x1], 1 }

</bundles_post_ra>
